<compile_context>
chip_gen: v7x
topology: tpu7x:2x2x1
jax: 0.10.0
libtpu: 0.0.40
codegen_flags: <defaults>
</compile_context>

<pallas_src>
import functools

import jax
import jax.numpy as jnp
from jax.experimental import pallas as pl
from jax.experimental.pallas import tpu as pltpu


# -----------------------------------------------------------------------------
# Pallas kernel: fused image encoder + projection heads + CLIP loss + finetune
# -----------------------------------------------------------------------------
def _clip_finetune_kernel(
    img_ref,      # [B, d_img]   flattened NCHW image
    txt_ref,      # [B, P]       text features, zero-padded to P lanes
    w_ref,        # [d_img + 5*P, P]  packed weights (enc, wpi, wfi, wpt, wft, wc)
    v_ref,        # [10, P]      packed rows: b_enc,bpi,bfi,gi,bei,bpt,bft,gt,bet,bc
    labels_ref,   # [B, 1] int32
    out_ref,      # [1, 1] f32
    *, temperature: float, d_img: int, d_proj: int,
):
    f32 = jnp.float32
    P = d_proj
    B = img_ref.shape[0]
    inv_b = 1.0 / B

    # ---- static slices of the packed parameter slabs (one DMA per slab) ----
    w_enc = w_ref[0:d_img, :]
    wpi = w_ref[d_img + 0 * P:d_img + 1 * P, :]
    wfi = w_ref[d_img + 1 * P:d_img + 2 * P, :]
    wpt = w_ref[d_img + 2 * P:d_img + 3 * P, :]
    wft = w_ref[d_img + 3 * P:d_img + 4 * P, :]
    wc = w_ref[d_img + 4 * P:d_img + 5 * P, :]

    b_enc = v_ref[0:1, :]
    bpi, bfi, gi, bei = v_ref[1:2, :], v_ref[2:3, :], v_ref[3:4, :], v_ref[4:5, :]
    bpt, bft, gt, bet = v_ref[5:6, :], v_ref[6:7, :], v_ref[7:8, :], v_ref[8:9, :]
    bc = v_ref[9:10, :]

    def mm(a, b):  # a @ b on the MXU, f32 accumulation
        return jnp.dot(a, b, preferred_element_type=f32)

    def mm_nt(a, b):  # a @ b.T; RHS transpose is fused into the matmul lowering
        return jax.lax.dot_general(a, b, (((1,), (1,)), ((), ())),
                                   preferred_element_type=f32)

    def gelu(x):  # exact (erf) GELU, matching nn.GELU() default
        return 0.5 * x * (1.0 + jax.lax.erf(x * 0.7071067811865476))

    def softmax_rows(x):
        m = jnp.max(x, axis=-1, keepdims=True)
        e = jnp.exp(x - m)
        return e * pl.reciprocal(jnp.sum(e, axis=-1, keepdims=True), approx=True)

    def log_softmax_rows(x):
        m = jnp.max(x, axis=-1, keepdims=True)
        s = x - m
        return s - jnp.log(jnp.sum(jnp.exp(s), axis=-1, keepdims=True))

    def log_softmax_cols(x):  # log_softmax over axis 0 (== rows of x.T)
        m = jnp.max(x, axis=0, keepdims=True)
        s = x - m
        return s - jnp.log(jnp.sum(jnp.exp(s), axis=0, keepdims=True))

    def sum_all(x):  # full reduction kept as a [1, 1] tile
        return jnp.sum(jnp.sum(x, axis=1, keepdims=True), axis=0, keepdims=True)

    def proj_head(x, wp, bp, wf, bf, gamma, beta):
        projected = mm(x, wp) + bp
        h = gelu(projected)
        h = mm(h, wf) + bf
        # dropout acts as identity in the forward pass  # TODO(synk): dropout ignored
        h = h + projected
        mu = jnp.mean(h, axis=-1, keepdims=True)
        var = jnp.mean(jnp.square(h - mu), axis=-1, keepdims=True)
        return (h - mu) * jax.lax.rsqrt(var + 1e-5) * gamma + beta

    # ---- fused image-encoder stub: flatten -> linear -> tanh ----
    img_feat = jnp.tanh(mm(img_ref[...], w_enc) + b_enc)              # [B, P]

    img_emb = proj_head(img_feat, wpi, bpi, wfi, bfi, gi, bei)        # [B, P]
    txt_emb = proj_head(txt_ref[...], wpt, bpt, wft, bft, gt, bet)    # [B, P]

    # ---- CLIP contrastive loss (mean only, so no logits.T / diag needed) ----
    inv_t = 1.0 / temperature
    logits = mm_nt(txt_emb, img_emb) * inv_t                          # [B, B]
    img_sim = mm_nt(img_emb, img_emb)
    txt_sim = mm_nt(txt_emb, txt_emb)
    targets = softmax_rows((img_sim + txt_sim) * (0.5 * temperature))

    # texts_loss.mean()  = -(1/B) sum_ij targets * row_log_softmax(logits)
    # images_loss.mean() = -(1/B) sum_ij targets * col_log_softmax(logits)
    texts_sum = sum_all(targets * log_softmax_rows(logits))
    images_sum = sum_all(targets * log_softmax_cols(logits))
    contrastive = -(0.75 * images_sum + 0.25 * texts_sum) * inv_b     # [1, 1]

    # ---- finetune head: classes lane-padded to P (padded bias = -1e9) ----
    ft_logits = mm(img_emb, wc) + bc                                  # [B, P]
    ft_lp = log_softmax_rows(ft_logits)
    cls_iota = jax.lax.broadcasted_iota(jnp.int32, (B, P), 1)
    one_hot = (cls_iota == labels_ref[...]).astype(f32)
    ft_per_ex = -jnp.sum(one_hot * ft_lp, axis=1, keepdims=True)      # [B, 1]
    ft_loss = jnp.sum(ft_per_ex, axis=0, keepdims=True) * inv_b       # [1, 1]

    out_ref[...] = contrastive + ft_loss


# -----------------------------------------------------------------------------
# Wrapper: packs parameters into 2 slabs, pads narrow dims, calls the kernel.
# -----------------------------------------------------------------------------
def clip_finetune_loss(image_nchw, txt_feat, params, labels, temperature):
    B = image_nchw.shape[0]
    img_flat = image_nchw.reshape(B, -1).astype(jnp.float32)          # [B, d_img]
    d_img = img_flat.shape[1]
    P = params["wpi"].shape[1]                                        # projection_dim

    # This packing assumes the image-encoder output dim == projection_dim (128).
    assert params["w_enc"].shape[1] == P and params["wpi"].shape[0] == P

    # lane-pad text features (text_embedding < 128) and finetune classes to P
    dt = txt_feat.shape[1]
    txt_pad = jnp.pad(txt_feat.astype(jnp.float32), ((0, 0), (0, P - dt)))
    wpt_pad = jnp.pad(params["wpt"], ((0, P - dt), (0, 0)))
    c = params["wc"].shape[1]
    wc_pad = jnp.pad(params["wc"], ((0, 0), (0, P - c)))
    bc_pad = jnp.pad(params["bc"], ((0, 0), (0, P - c)), constant_values=-1e9)

    # one weight slab (every weight has P output columns)  -> single DMA
    w_slab = jnp.concatenate(
        [params["w_enc"], params["wpi"], params["wfi"], wpt_pad, params["wft"],
         wc_pad], axis=0)                                             # [d_img+5P, P]
    # one bias / gamma / beta slab                         -> single DMA
    v_slab = jnp.concatenate(
        [params["b_enc"], params["bpi"], params["bfi"], params["gi"], params["bei"],
         params["bpt"], params["bft"], params["gt"], params["bet"], bc_pad],
        axis=0)                                                       # [10, P]

    labels2d = labels.astype(jnp.int32).reshape(-1, 1)
    args = (img_flat, txt_pad, w_slab, v_slab, labels2d)

    bytes_accessed = sum(int(a.size) * a.dtype.itemsize for a in args) + 4
    cost = pl.CostEstimate(
        flops=int(2 * B * d_img * P + 10 * B * P * P + 6 * B * B * P),
        transcendentals=int(B * (5 * P + 4 * B)),
        bytes_accessed=int(bytes_accessed),
    )

    kernel = functools.partial(
        _clip_finetune_kernel,
        temperature=float(temperature), d_img=int(d_img), d_proj=int(P))

    vmem = pl.BlockSpec(memory_space=pltpu.MemorySpace.VMEM)
    out = pl.pallas_call(
        kernel,
        out_shape=jax.ShapeDtypeStruct((1, 1), jnp.float32),
        in_specs=[vmem] * len(args),
        out_specs=vmem,
        cost_estimate=cost,
    )(*args)
    return out[0, 0]


# -----------------------------------------------------------------------------
# Text-encoder stub (plain JAX glue; gather has no clean tiny-Pallas equivalent)
# -----------------------------------------------------------------------------
# TODO(synk): DistilBertModel backbone not reproduced; replaced by an embedding
# lookup: token-0 embedding + attention-masked mean, yielding [B, text_embedding].
def text_encoder_stub(input_ids, attention_mask, emb_table):
    emb = emb_table[input_ids]                                        # [B, S, Dt]
    mask = attention_mask.astype(jnp.float32)[..., None]              # [B, S, 1]
    mean = (emb * mask).sum(1) / jnp.maximum(mask.sum(1), 1.0)        # [B, Dt]
    return emb[:, 0, :] + 0.5 * mean                                  # target_token_idx = 0


# -----------------------------------------------------------------------------
# Pure-JAX reference (mirrors the PyTorch forward) for a correctness check
# -----------------------------------------------------------------------------
def reference_loss(image_nchw, txt_feat, p, labels, temperature):
    B = image_nchw.shape[0]
    # TODO(synk): vit_base_patch16 backbone replaced by flatten->linear->tanh stub.
    img_feat = jnp.tanh(image_nchw.reshape(B, -1) @ p["w_enc"] + p["b_enc"])

    def proj(x, wp, bp, wf, bf, g, be):
        projected = x @ wp + bp
        h = jax.nn.gelu(projected, approximate=False)
        h = h @ wf + bf
        h = h + projected
        mu = h.mean(-1, keepdims=True)
        var = ((h - mu) ** 2).mean(-1, keepdims=True)
        return (h - mu) / jnp.sqrt(var + 1e-5) * g + be

    img_emb = proj(img_feat, p["wpi"], p["bpi"], p["wfi"], p["bfi"], p["gi"], p["bei"])
    txt_emb = proj(txt_feat, p["wpt"], p["bpt"], p["wft"], p["bft"], p["gt"], p["bet"])

    logits = txt_emb @ img_emb.T / temperature
    targets = jax.nn.softmax(
        (img_emb @ img_emb.T + txt_emb @ txt_emb.T) / 2 * temperature, axis=-1)
    texts_loss = (-targets * jax.nn.log_softmax(logits, axis=-1)).sum(1)
    images_loss = (-targets.T * jax.nn.log_softmax(logits.T, axis=-1)).sum(1)
    loss = 0.75 * images_loss + 0.25 * texts_loss

    ft_logits = img_emb @ p["wc"] + p["bc"]
    lp = jax.nn.log_softmax(ft_logits, axis=-1)
    ft_loss = -jnp.take_along_axis(lp, labels[:, None], axis=1).mean()
    return loss.mean() + ft_loss


# -----------------------------------------------------------------------------
if __name__ == "__main__":
    # cfg_paras (small, synthetic)
    B, CH, H, W = 8, 3, 16, 16
    SEQ, VOCAB = 8, 32
    IMAGE_EMB, TEXT_EMB, PROJ_DIM, NUM_CLASSES = 128, 64, 128, 16
    TEMPERATURE = 1.0

    key = jax.random.PRNGKey(0)
    ks = jax.random.split(key, 16)

    # batch
    image = jax.random.normal(ks[0], (B, CH, H, W), jnp.float32)       # NCHW
    input_ids = jax.random.randint(ks[1], (B, SEQ), 0, VOCAB, jnp.int32)
    attention_mask = jnp.ones((B, SEQ), jnp.int32)
    labels = jax.random.randint(ks[2], (B,), 0, NUM_CLASSES, jnp.int32)

    # text stub-encoder parameter
    emb_table = 0.02 * jax.random.normal(ks[4], (VOCAB, TEXT_EMB), jnp.float32)

    def lin(k, fan_in, fan_out):
        return 0.02 * jax.random.normal(k, (fan_in, fan_out), jnp.float32)

    params = {
        # fused image-encoder stub (ViT-B/16 replaced by flatten->linear->tanh)
        "w_enc": lin(ks[3], CH * H * W, IMAGE_EMB),
        "b_enc": jnp.zeros((1, IMAGE_EMB), jnp.float32),
        # image ProjectionHead (nn.Linear weights pre-transposed to [in, out])
        "wpi": lin(ks[5], IMAGE_EMB, PROJ_DIM),
        "bpi": jnp.zeros((1, PROJ_DIM), jnp.float32),
        "wfi": lin(ks[6], PROJ_DIM, PROJ_DIM),
        "bfi": 0.01 * jax.random.normal(ks[7], (1, PROJ_DIM), jnp.float32),
        "gi": jnp.ones((1, PROJ_DIM), jnp.float32),
        "bei": jnp.zeros((1, PROJ_DIM), jnp.float32),
        # text ProjectionHead
        "wpt": lin(ks[8], TEXT_EMB, PROJ_DIM),
        "bpt": jnp.zeros((1, PROJ_DIM), jnp.float32),
        "wft": lin(ks[9], PROJ_DIM, PROJ_DIM),
        "bft": 0.01 * jax.random.normal(ks[10], (1, PROJ_DIM), jnp.float32),
        "gt": jnp.ones((1, PROJ_DIM), jnp.float32),
        "bet": jnp.zeros((1, PROJ_DIM), jnp.float32),
        # finetune_projection
        "wc": lin(ks[11], PROJ_DIM, NUM_CLASSES),
        "bc": 0.01 * jax.random.normal(ks[12], (1, NUM_CLASSES), jnp.float32),
    }

    # text encoder (plain JAX glue; image encoder is fused inside the kernel)
    txt_feat = text_encoder_stub(input_ids, attention_mask, emb_table)  # [B, TEXT_EMB]

    # Pallas kernel
    loss = clip_finetune_loss(image, txt_feat, params, labels, TEMPERATURE)
    loss = jax.block_until_ready(loss)

    # correctness check against pure-JAX reference of the same math
    ref = reference_loss(image, txt_feat, params, labels, TEMPERATURE)
    assert jnp.allclose(loss, ref, rtol=2e-3, atol=2e-3), (loss, ref)

    print("KERNEL_OK")
</pallas_src>

<mosaic_0001>
module attributes {stable_mosaic.version = 11 : i64} {
  func.func @_clip_finetune_kernel(%arg0: memref<8x768xf32, #tpu.memory_space<vmem>>, %arg1: memref<8x128xf32, #tpu.memory_space<vmem>>, %arg2: memref<1408x128xf32, #tpu.memory_space<vmem>>, %arg3: memref<10x128xf32, #tpu.memory_space<vmem>>, %arg4: memref<8x1xi32, #tpu.memory_space<vmem>>, %arg5: memref<1x1xf32, #tpu.memory_space<vmem>>) attributes {dimension_semantics = [], scalar_prefetch = 0 : i64, scratch_operands = 0 : i64, tpu.core_type = #tpu.core_type<tc>} {
    %c0 = arith.constant 0 : index
    %c0_0 = arith.constant 0 : index
    %0 = vector.load %arg2[%c0, %c0_0] : memref<1408x128xf32, #tpu.memory_space<vmem>>, vector<768x128xf32>
    %c768 = arith.constant 768 : index
    %c0_1 = arith.constant 0 : index
    %1 = vector.load %arg2[%c768, %c0_1] : memref<1408x128xf32, #tpu.memory_space<vmem>>, vector<128x128xf32>
    %c896 = arith.constant 896 : index
    %c0_2 = arith.constant 0 : index
    %2 = vector.load %arg2[%c896, %c0_2] : memref<1408x128xf32, #tpu.memory_space<vmem>>, vector<128x128xf32>
    %c1024 = arith.constant 1024 : index
    %c0_3 = arith.constant 0 : index
    %3 = vector.load %arg2[%c1024, %c0_3] : memref<1408x128xf32, #tpu.memory_space<vmem>>, vector<128x128xf32>
    %c1152 = arith.constant 1152 : index
    %c0_4 = arith.constant 0 : index
    %4 = vector.load %arg2[%c1152, %c0_4] : memref<1408x128xf32, #tpu.memory_space<vmem>>, vector<128x128xf32>
    %c1280 = arith.constant 1280 : index
    %c0_5 = arith.constant 0 : index
    %5 = vector.load %arg2[%c1280, %c0_5] : memref<1408x128xf32, #tpu.memory_space<vmem>>, vector<128x128xf32>
    %c0_6 = arith.constant 0 : index
    %c0_7 = arith.constant 0 : index
    %6 = vector.load %arg3[%c0_6, %c0_7] : memref<10x128xf32, #tpu.memory_space<vmem>>, vector<1x128xf32>
    %c1 = arith.constant 1 : index
    %c0_8 = arith.constant 0 : index
    %7 = vector.load %arg3[%c1, %c0_8] : memref<10x128xf32, #tpu.memory_space<vmem>>, vector<1x128xf32>
    %c2 = arith.constant 2 : index
    %c0_9 = arith.constant 0 : index
    %8 = vector.load %arg3[%c2, %c0_9] : memref<10x128xf32, #tpu.memory_space<vmem>>, vector<1x128xf32>
    %c3 = arith.constant 3 : index
    %c0_10 = arith.constant 0 : index
    %9 = vector.load %arg3[%c3, %c0_10] : memref<10x128xf32, #tpu.memory_space<vmem>>, vector<1x128xf32>
    %c4 = arith.constant 4 : index
    %c0_11 = arith.constant 0 : index
    %10 = vector.load %arg3[%c4, %c0_11] : memref<10x128xf32, #tpu.memory_space<vmem>>, vector<1x128xf32>
    %c5 = arith.constant 5 : index
    %c0_12 = arith.constant 0 : index
    %11 = vector.load %arg3[%c5, %c0_12] : memref<10x128xf32, #tpu.memory_space<vmem>>, vector<1x128xf32>
    %c6 = arith.constant 6 : index
    %c0_13 = arith.constant 0 : index
    %12 = vector.load %arg3[%c6, %c0_13] : memref<10x128xf32, #tpu.memory_space<vmem>>, vector<1x128xf32>
    %c7 = arith.constant 7 : index
    %c0_14 = arith.constant 0 : index
    %13 = vector.load %arg3[%c7, %c0_14] : memref<10x128xf32, #tpu.memory_space<vmem>>, vector<1x128xf32>
    %c8 = arith.constant 8 : index
    %c0_15 = arith.constant 0 : index
    %14 = vector.load %arg3[%c8, %c0_15] : memref<10x128xf32, #tpu.memory_space<vmem>>, vector<1x128xf32>
    %c9 = arith.constant 9 : index
    %c0_16 = arith.constant 0 : index
    %15 = vector.load %arg3[%c9, %c0_16] : memref<10x128xf32, #tpu.memory_space<vmem>>, vector<1x128xf32>
    %c0_17 = arith.constant 0 : index
    %c0_18 = arith.constant 0 : index
    %16 = vector.load %arg0[%c0_17, %c0_18] : memref<8x768xf32, #tpu.memory_space<vmem>>, vector<8x768xf32>
    %cst = arith.constant dense<0.000000e+00> : vector<8x128xf32>
    %17 = tpu.matmul %16, %0, %cst {dimension_numbers = #tpu.dot_dimension_numbers<[1], [0], [0], [1], [0, 0, 1, 1], [], []>} : vector<8x768xf32>, vector<768x128xf32>, vector<8x128xf32> -> vector<8x128xf32>
    %18 = vector.broadcast %6 : vector<1x128xf32> to vector<8x128xf32>
    %19 = arith.addf %17, %18 : vector<8x128xf32>
    %20 = math.tanh %19 : vector<8x128xf32>
    %cst_19 = arith.constant dense<0.000000e+00> : vector<8x128xf32>
    %21 = tpu.matmul %20, %1, %cst_19 {dimension_numbers = #tpu.dot_dimension_numbers<[1], [0], [0], [1], [0, 0, 1, 1], [], []>} : vector<8x128xf32>, vector<128x128xf32>, vector<8x128xf32> -> vector<8x128xf32>
    %22 = vector.broadcast %7 : vector<1x128xf32> to vector<8x128xf32>
    %23 = arith.addf %21, %22 : vector<8x128xf32>
    %cst_20 = arith.constant 5.000000e-01 : f32
    %24 = vector.broadcast %cst_20 : f32 to vector<8x128xf32>
    %25 = arith.mulf %24, %23 : vector<8x128xf32>
    %cst_21 = arith.constant 0.707106769 : f32
    %26 = vector.broadcast %cst_21 : f32 to vector<8x128xf32>
    %27 = arith.mulf %23, %26 : vector<8x128xf32>
    %28 = math.erf %27 : vector<8x128xf32>
    %cst_22 = arith.constant 1.000000e+00 : f32
    %29 = vector.broadcast %cst_22 : f32 to vector<8x128xf32>
    %30 = arith.addf %29, %28 : vector<8x128xf32>
    %31 = arith.mulf %25, %30 : vector<8x128xf32>
    %cst_23 = arith.constant dense<0.000000e+00> : vector<8x128xf32>
    %32 = tpu.matmul %31, %2, %cst_23 {dimension_numbers = #tpu.dot_dimension_numbers<[1], [0], [0], [1], [0, 0, 1, 1], [], []>} : vector<8x128xf32>, vector<128x128xf32>, vector<8x128xf32> -> vector<8x128xf32>
    %33 = vector.broadcast %8 : vector<1x128xf32> to vector<8x128xf32>
    %34 = arith.addf %32, %33 : vector<8x128xf32>
    %35 = arith.addf %34, %23 : vector<8x128xf32>
    %cst_24 = arith.constant dense<0.000000e+00> : vector<8xf32>
    %36 = vector.multi_reduction <add>, %35, %cst_24 [1] : vector<8x128xf32> to vector<8xf32>
    %37 = vector.shape_cast %36 : vector<8xf32> to vector<8x1xf32>
    %cst_25 = arith.constant 1.280000e+02 : f32
    %38 = vector.broadcast %cst_25 : f32 to vector<8x1xf32>
    %39 = arith.divf %37, %38 : vector<8x1xf32>
    %40 = vector.broadcast %39 : vector<8x1xf32> to vector<8x128xf32>
    %41 = arith.subf %35, %40 : vector<8x128xf32>
    %42 = arith.mulf %41, %41 : vector<8x128xf32>
    %cst_26 = arith.constant dense<0.000000e+00> : vector<8xf32>
    %43 = vector.multi_reduction <add>, %42, %cst_26 [1] : vector<8x128xf32> to vector<8xf32>
    %44 = vector.shape_cast %43 : vector<8xf32> to vector<8x1xf32>
    %cst_27 = arith.constant 1.280000e+02 : f32
    %45 = vector.broadcast %cst_27 : f32 to vector<8x1xf32>
    %46 = arith.divf %44, %45 : vector<8x1xf32>
    %47 = vector.broadcast %39 : vector<8x1xf32> to vector<8x128xf32>
    %48 = arith.subf %35, %47 : vector<8x128xf32>
    %cst_28 = arith.constant 9.99999974E-6 : f32
    %49 = vector.broadcast %cst_28 : f32 to vector<8x1xf32>
    %50 = arith.addf %46, %49 : vector<8x1xf32>
    %51 = math.rsqrt %50 : vector<8x1xf32>
    %52 = vector.broadcast %51 : vector<8x1xf32> to vector<8x128xf32>
    %53 = arith.mulf %48, %52 : vector<8x128xf32>
    %54 = vector.broadcast %9 : vector<1x128xf32> to vector<8x128xf32>
    %55 = arith.mulf %53, %54 : vector<8x128xf32>
    %56 = vector.broadcast %10 : vector<1x128xf32> to vector<8x128xf32>
    %57 = arith.addf %55, %56 : vector<8x128xf32>
    %c0_29 = arith.constant 0 : index
    %c0_30 = arith.constant 0 : index
    %58 = vector.load %arg1[%c0_29, %c0_30] : memref<8x128xf32, #tpu.memory_space<vmem>>, vector<8x128xf32>
    %cst_31 = arith.constant dense<0.000000e+00> : vector<8x128xf32>
    %59 = tpu.matmul %58, %3, %cst_31 {dimension_numbers = #tpu.dot_dimension_numbers<[1], [0], [0], [1], [0, 0, 1, 1], [], []>} : vector<8x128xf32>, vector<128x128xf32>, vector<8x128xf32> -> vector<8x128xf32>
    %60 = vector.broadcast %11 : vector<1x128xf32> to vector<8x128xf32>
    %61 = arith.addf %59, %60 : vector<8x128xf32>
    %cst_32 = arith.constant 5.000000e-01 : f32
    %62 = vector.broadcast %cst_32 : f32 to vector<8x128xf32>
    %63 = arith.mulf %62, %61 : vector<8x128xf32>
    %cst_33 = arith.constant 0.707106769 : f32
    %64 = vector.broadcast %cst_33 : f32 to vector<8x128xf32>
    %65 = arith.mulf %61, %64 : vector<8x128xf32>
    %66 = math.erf %65 : vector<8x128xf32>
    %cst_34 = arith.constant 1.000000e+00 : f32
    %67 = vector.broadcast %cst_34 : f32 to vector<8x128xf32>
    %68 = arith.addf %67, %66 : vector<8x128xf32>
    %69 = arith.mulf %63, %68 : vector<8x128xf32>
    %cst_35 = arith.constant dense<0.000000e+00> : vector<8x128xf32>
    %70 = tpu.matmul %69, %4, %cst_35 {dimension_numbers = #tpu.dot_dimension_numbers<[1], [0], [0], [1], [0, 0, 1, 1], [], []>} : vector<8x128xf32>, vector<128x128xf32>, vector<8x128xf32> -> vector<8x128xf32>
    %71 = vector.broadcast %12 : vector<1x128xf32> to vector<8x128xf32>
    %72 = arith.addf %70, %71 : vector<8x128xf32>
    %73 = arith.addf %72, %61 : vector<8x128xf32>
    %cst_36 = arith.constant dense<0.000000e+00> : vector<8xf32>
    %74 = vector.multi_reduction <add>, %73, %cst_36 [1] : vector<8x128xf32> to vector<8xf32>
    %75 = vector.shape_cast %74 : vector<8xf32> to vector<8x1xf32>
    %cst_37 = arith.constant 1.280000e+02 : f32
    %76 = vector.broadcast %cst_37 : f32 to vector<8x1xf32>
    %77 = arith.divf %75, %76 : vector<8x1xf32>
    %78 = vector.broadcast %77 : vector<8x1xf32> to vector<8x128xf32>
    %79 = arith.subf %73, %78 : vector<8x128xf32>
    %80 = arith.mulf %79, %79 : vector<8x128xf32>
    %cst_38 = arith.constant dense<0.000000e+00> : vector<8xf32>
    %81 = vector.multi_reduction <add>, %80, %cst_38 [1] : vector<8x128xf32> to vector<8xf32>
    %82 = vector.shape_cast %81 : vector<8xf32> to vector<8x1xf32>
    %cst_39 = arith.constant 1.280000e+02 : f32
    %83 = vector.broadcast %cst_39 : f32 to vector<8x1xf32>
    %84 = arith.divf %82, %83 : vector<8x1xf32>
    %85 = vector.broadcast %77 : vector<8x1xf32> to vector<8x128xf32>
    %86 = arith.subf %73, %85 : vector<8x128xf32>
    %cst_40 = arith.constant 9.99999974E-6 : f32
    %87 = vector.broadcast %cst_40 : f32 to vector<8x1xf32>
    %88 = arith.addf %84, %87 : vector<8x1xf32>
    %89 = math.rsqrt %88 : vector<8x1xf32>
    %90 = vector.broadcast %89 : vector<8x1xf32> to vector<8x128xf32>
    %91 = arith.mulf %86, %90 : vector<8x128xf32>
    %92 = vector.broadcast %13 : vector<1x128xf32> to vector<8x128xf32>
    %93 = arith.mulf %91, %92 : vector<8x128xf32>
    %94 = vector.broadcast %14 : vector<1x128xf32> to vector<8x128xf32>
    %95 = arith.addf %93, %94 : vector<8x128xf32>
    %cst_41 = arith.constant dense<0.000000e+00> : vector<8x8xf32>
    %96 = tpu.matmul %95, %57, %cst_41 {dimension_numbers = #tpu.dot_dimension_numbers<[1], [1], [0], [0], [0, 0, 1, 0], [], []>} : vector<8x128xf32>, vector<8x128xf32>, vector<8x8xf32> -> vector<8x8xf32>
    %cst_42 = arith.constant 1.000000e+00 : f32
    %97 = vector.broadcast %cst_42 : f32 to vector<8x8xf32>
    %98 = arith.mulf %96, %97 : vector<8x8xf32>
    %cst_43 = arith.constant dense<0.000000e+00> : vector<8x8xf32>
    %99 = tpu.matmul %57, %57, %cst_43 {dimension_numbers = #tpu.dot_dimension_numbers<[1], [1], [0], [0], [0, 0, 1, 0], [], []>} : vector<8x128xf32>, vector<8x128xf32>, vector<8x8xf32> -> vector<8x8xf32>
    %cst_44 = arith.constant dense<0.000000e+00> : vector<8x8xf32>
    %100 = tpu.matmul %95, %95, %cst_44 {dimension_numbers = #tpu.dot_dimension_numbers<[1], [1], [0], [0], [0, 0, 1, 0], [], []>} : vector<8x128xf32>, vector<8x128xf32>, vector<8x8xf32> -> vector<8x8xf32>
    %101 = arith.addf %99, %100 : vector<8x8xf32>
    %cst_45 = arith.constant 5.000000e-01 : f32
    %102 = vector.broadcast %cst_45 : f32 to vector<8x8xf32>
    %103 = arith.mulf %101, %102 : vector<8x8xf32>
    %cst_46 = arith.constant dense<0xFF800000> : vector<8xf32>
    %104 = vector.multi_reduction <maximumf>, %103, %cst_46 [1] : vector<8x8xf32> to vector<8xf32>
    %105 = vector.shape_cast %104 : vector<8xf32> to vector<8x1xf32>
    %106 = vector.broadcast %105 : vector<8x1xf32> to vector<8x8xf32>
    %107 = arith.subf %103, %106 : vector<8x8xf32>
    %108 = math.exp %107 : vector<8x8xf32>
    %cst_47 = arith.constant dense<0.000000e+00> : vector<8xf32>
    %109 = vector.multi_reduction <add>, %108, %cst_47 [1] : vector<8x8xf32> to vector<8xf32>
    %110 = vector.shape_cast %109 : vector<8xf32> to vector<8x1xf32>
    %111 = tpu.reciprocal %110 {approx = true} : vector<8x1xf32> -> vector<8x1xf32>
    %112 = vector.broadcast %111 : vector<8x1xf32> to vector<8x8xf32>
    %113 = arith.mulf %108, %112 : vector<8x8xf32>
    %cst_48 = arith.constant dense<0xFF800000> : vector<8xf32>
    %114 = vector.multi_reduction <maximumf>, %98, %cst_48 [1] : vector<8x8xf32> to vector<8xf32>
    %115 = vector.shape_cast %114 : vector<8xf32> to vector<8x1xf32>
    %116 = vector.broadcast %115 : vector<8x1xf32> to vector<8x8xf32>
    %117 = arith.subf %98, %116 : vector<8x8xf32>
    %118 = math.exp %117 : vector<8x8xf32>
    %cst_49 = arith.constant dense<0.000000e+00> : vector<8xf32>
    %119 = vector.multi_reduction <add>, %118, %cst_49 [1] : vector<8x8xf32> to vector<8xf32>
    %120 = vector.shape_cast %119 : vector<8xf32> to vector<8x1xf32>
    %121 = math.log %120 : vector<8x1xf32>
    %122 = vector.broadcast %121 : vector<8x1xf32> to vector<8x8xf32>
    %123 = arith.subf %117, %122 : vector<8x8xf32>
    %124 = arith.mulf %113, %123 : vector<8x8xf32>
    %cst_50 = arith.constant dense<0.000000e+00> : vector<8xf32>
    %125 = vector.multi_reduction <add>, %124, %cst_50 [1] : vector<8x8xf32> to vector<8xf32>
    %126 = vector.shape_cast %125 : vector<8xf32> to vector<8x1xf32>
    %cst_51 = arith.constant dense<0.000000e+00> : vector<1xf32>
    %127 = vector.multi_reduction <add>, %126, %cst_51 [0] : vector<8x1xf32> to vector<1xf32>
    %128 = vector.shape_cast %127 : vector<1xf32> to vector<1x1xf32>
    %cst_52 = arith.constant dense<0xFF800000> : vector<8xf32>
    %129 = vector.multi_reduction <maximumf>, %98, %cst_52 [0] : vector<8x8xf32> to vector<8xf32>
    %130 = vector.shape_cast %129 : vector<8xf32> to vector<1x8xf32>
    %131 = vector.broadcast %130 : vector<1x8xf32> to vector<8x8xf32>
    %132 = arith.subf %98, %131 : vector<8x8xf32>
    %133 = math.exp %132 : vector<8x8xf32>
    %cst_53 = arith.constant dense<0.000000e+00> : vector<8xf32>
    %134 = vector.multi_reduction <add>, %133, %cst_53 [0] : vector<8x8xf32> to vector<8xf32>
    %135 = vector.shape_cast %134 : vector<8xf32> to vector<1x8xf32>
    %136 = math.log %135 : vector<1x8xf32>
    %137 = vector.broadcast %136 : vector<1x8xf32> to vector<8x8xf32>
    %138 = arith.subf %132, %137 : vector<8x8xf32>
    %139 = arith.mulf %113, %138 : vector<8x8xf32>
    %cst_54 = arith.constant dense<0.000000e+00> : vector<8xf32>
    %140 = vector.multi_reduction <add>, %139, %cst_54 [1] : vector<8x8xf32> to vector<8xf32>
    %141 = vector.shape_cast %140 : vector<8xf32> to vector<8x1xf32>
    %cst_55 = arith.constant dense<0.000000e+00> : vector<1xf32>
    %142 = vector.multi_reduction <add>, %141, %cst_55 [0] : vector<8x1xf32> to vector<1xf32>
    %143 = vector.shape_cast %142 : vector<1xf32> to vector<1x1xf32>
    %cst_56 = arith.constant 7.500000e-01 : f32
    %144 = vector.broadcast %cst_56 : f32 to vector<1x1xf32>
    %145 = arith.mulf %144, %143 : vector<1x1xf32>
    %cst_57 = arith.constant 2.500000e-01 : f32
    %146 = vector.broadcast %cst_57 : f32 to vector<1x1xf32>
    %147 = arith.mulf %146, %128 : vector<1x1xf32>
    %148 = arith.addf %145, %147 : vector<1x1xf32>
    %cst_58 = arith.constant 0.000000e+00 : f32
    %149 = vector.broadcast %cst_58 : f32 to vector<1x1xf32>
    %150 = arith.subf %149, %148 : vector<1x1xf32>
    %cst_59 = arith.constant 1.250000e-01 : f32
    %151 = vector.broadcast %cst_59 : f32 to vector<1x1xf32>
    %152 = arith.mulf %150, %151 : vector<1x1xf32>
    %cst_60 = arith.constant dense<0.000000e+00> : vector<8x128xf32>
    %153 = tpu.matmul %57, %5, %cst_60 {dimension_numbers = #tpu.dot_dimension_numbers<[1], [0], [0], [1], [0, 0, 1, 1], [], []>} : vector<8x128xf32>, vector<128x128xf32>, vector<8x128xf32> -> vector<8x128xf32>
    %154 = vector.broadcast %15 : vector<1x128xf32> to vector<8x128xf32>
    %155 = arith.addf %153, %154 : vector<8x128xf32>
    %cst_61 = arith.constant dense<0xFF800000> : vector<8xf32>
    %156 = vector.multi_reduction <maximumf>, %155, %cst_61 [1] : vector<8x128xf32> to vector<8xf32>
    %157 = vector.shape_cast %156 : vector<8xf32> to vector<8x1xf32>
    %158 = vector.broadcast %157 : vector<8x1xf32> to vector<8x128xf32>
    %159 = arith.subf %155, %158 : vector<8x128xf32>
    %160 = math.exp %159 : vector<8x128xf32>
    %cst_62 = arith.constant dense<0.000000e+00> : vector<8xf32>
    %161 = vector.multi_reduction <add>, %160, %cst_62 [1] : vector<8x128xf32> to vector<8xf32>
    %162 = vector.shape_cast %161 : vector<8xf32> to vector<8x1xf32>
    %163 = math.log %162 : vector<8x1xf32>
    %164 = vector.broadcast %163 : vector<8x1xf32> to vector<8x128xf32>
    %165 = arith.subf %159, %164 : vector<8x128xf32>
    %166 = tpu.iota {dimensions = array<i32: 1>} : vector<8x128xi32>
    %c0_63 = arith.constant 0 : index
    %c0_64 = arith.constant 0 : index
    %167 = vector.load %arg4[%c0_63, %c0_64] : memref<8x1xi32, #tpu.memory_space<vmem>>, vector<8x1xi32>
    %168 = vector.broadcast %167 : vector<8x1xi32> to vector<8x128xi32>
    %169 = arith.cmpi eq, %166, %168 : vector<8x128xi32>
    %170 = arith.extui %169 : vector<8x128xi1> to vector<8x128xi32>
    %171 = arith.sitofp %170 : vector<8x128xi32> to vector<8x128xf32>
    %172 = arith.mulf %171, %165 : vector<8x128xf32>
    %cst_65 = arith.constant dense<0.000000e+00> : vector<8xf32>
    %173 = vector.multi_reduction <add>, %172, %cst_65 [1] : vector<8x128xf32> to vector<8xf32>
    %174 = vector.shape_cast %173 : vector<8xf32> to vector<8x1xf32>
    %cst_66 = arith.constant 0.000000e+00 : f32
    %175 = vector.broadcast %cst_66 : f32 to vector<8x1xf32>
    %176 = arith.subf %175, %174 : vector<8x1xf32>
    %cst_67 = arith.constant dense<0.000000e+00> : vector<1xf32>
    %177 = vector.multi_reduction <add>, %176, %cst_67 [0] : vector<8x1xf32> to vector<1xf32>
    %178 = vector.shape_cast %177 : vector<1xf32> to vector<1x1xf32>
    %cst_68 = arith.constant 1.250000e-01 : f32
    %179 = vector.broadcast %cst_68 : f32 to vector<1x1xf32>
    %180 = arith.mulf %178, %179 : vector<1x1xf32>
    %181 = arith.addf %152, %180 : vector<1x1xf32>
    %c0_69 = arith.constant 0 : index
    %c0_70 = arith.constant 0 : index
    %182 = vector.load %arg5[%c0_69, %c0_70] : memref<1x1xf32, #tpu.memory_space<vmem>>, vector<1x1xf32>
    tpu.vector_store %arg5[%c0_69, %c0_70], %181 {strides = array<i32>} : memref<1x1xf32, #tpu.memory_space<vmem>>, vector<1x1xf32>,
    return
  }
}

</mosaic_0001>

<bundles_post_ra>
// kernel: tpu_custom_call.1
= control target key start
LH: loop header
LB: loop body
LE: loop exit
PB: predicated region body
PF: predicated region fallthrough
CT: control target
= control target key end

     0   :  { %10 = vsyncpa [#allocation3], 0  ;;  %s2158_s0 = inlined_call_operand.hbm [shape: f32[8,768], index: 0, kind: input, shape index: {}]   ;;  %s2159_s1 = inlined_call_operand.hbm [shape: f32[8,128], index: 1, kind: input, shape index: {}]   ;;  %s2160_s2 = inlined_call_operand.hbm [shape: f32[1408,128], index: 2, kind: input, shape index: {}]   ;;  %s2161_s3 = inlined_call_operand.vmem [shape: f32[10,128], index: 3, kind: input, shape index: {}]   ;;  %s2162_s4 = inlined_call_operand.vmem [shape: s32[8,1], index: 4, kind: input, shape index: {}]   ;;  %s2163_s5 = inlined_call_operand.hbm [shape: f32[1,1], index: 5, kind: output, shape index: {}]  }
   0x1   :  { %11 = vsyncpa [#allocation6], 0 }
   0x2   :  { %12 = vsyncpa [#allocation4], 0  ;;  %s1965_s18 = smov [#allocation5]   ;;  %s1966_s20 = smov [#allocation2]  }
   0x3   :  { %s29_s19 = sshll.u32 %s1965_s18, 4  ;;  %s19_s21 = sshll.u32 %s1966_s20, 4  ;;  %s30_s19 = int_to_ptr.vmem [resolvable:$true] %s29_s19  ;;  %s20_s21 = int_to_ptr.vmem [resolvable:$true] %s19_s21 }
   0x4   :  { %s1871_s24 = scalar_lea.hbm %s2159_s1, 128 }
   0x5   :  { %p1872_p0 = scmp.ne.s32.totalorder %s2159_s1, %s1871_s24  ;;  %p1875_p1 = scmp.lt.u32.totalorder %s1871_s24, %s2159_s1 }
   0x7   :  { %p1877_p2 = pnand %p1875_p1, %p1872_p0 }
   0x9   :  { %1880 = shalt.err (!%p1877_p2)
}
   0xa   :  { %s1881_s29 = scalar_lea.vmem %s30_s19, 128  ;;  %p1886_p4 = scmp.lt.s32.totalorder %s30_s19, %s30_s19 }
   0xb   :  { %p1882_p3 = scmp.ne.s32.totalorder %s30_s19, %s1881_s29  ;;  %p1887_p5 = scmp.lt.s32.totalorder %s1881_s29, %s1881_s29 }
   0xd   :  { %p1888_p6 = por %p1887_p5, %p1886_p4 }
   0xf   :  { %p1889_p7 = pnand %p1888_p6, %p1882_p3 }
  0x11   :  { %1892 = shalt.err (!%p1889_p7)
}
  0x12   :  { %32 = dma.hbm_to_vmem [thread:$0]  %s2159_s1, 128, %s30_s19, [#allocation6]  }
  0x13   :  { %s1893_s9 = scalar_lea.hbm %s2158_s0, 768 }
  0x14   :  { %p1894_p8 = scmp.ne.s32.totalorder %s2158_s0, %s1893_s9  ;;  %p1897_p9 = scmp.lt.u32.totalorder %s1893_s9, %s2158_s0 }
  0x16   :  { %p1899_p10 = pnand %p1897_p9, %p1894_p8 }
  0x18   :  { %1902 = shalt.err (!%p1899_p10)
}
  0x19   :  { %s1903_s14 = scalar_lea.vmem %s20_s21, 768  ;;  %p1908_p12 = scmp.lt.s32.totalorder %s20_s21, %s20_s21 }
  0x1a   :  { %p1904_p11 = scmp.ne.s32.totalorder %s20_s21, %s1903_s14  ;;  %p1909_p13 = scmp.lt.s32.totalorder %s1903_s14, %s1903_s14 }
  0x1c   :  { %p1910_p0 = por %p1909_p13, %p1908_p12 }
  0x1e   :  { %p1911_p1 = pnand %p1910_p0, %p1904_p11 }
  0x20   :  { %1914 = shalt.err (!%p1911_p1)
}
  0x21   :  { %22 = dma.hbm_to_vmem [thread:$0]  %s2158_s0, 768, %s20_s21, [#allocation3]  }
  0x22   :  { %s1967_s16 = smov [#allocation7]   ;;  %s1915_s20 = scalar_lea.hbm %s2160_s2, 22528 }
  0x23   :  { %s38_s17 = sshll.u32 %s1967_s16, 4  ;;  %p1916_p2 = scmp.ne.s32.totalorder %s2160_s2, %s1915_s20  ;;  %s39_s17 = int_to_ptr.vmem [resolvable:$true] %s38_s17 }
  0x24   :  { %p1919_p3 = scmp.lt.u32.totalorder %s1915_s20, %s2160_s2 }
  0x26   :  { %p1921_p4 = pnand %p1919_p3, %p1916_p2 }
  0x28   :  { %1924 = shalt.err (!%p1921_p4)
}
  0x29   :  { %s1925_s26 = scalar_lea.vmem %s39_s17, 22528  ;;  %p1930_p6 = scmp.lt.s32.totalorder %s39_s17, %s39_s17 }
  0x2a   :  { %p1926_p5 = scmp.ne.s32.totalorder %s39_s17, %s1925_s26  ;;  %p1931_p7 = scmp.lt.s32.totalorder %s1925_s26, %s1925_s26 }
  0x2c   :  { %p1932_p8 = por %p1931_p7, %p1930_p6 }
  0x2e   :  { %p1933_p9 = pnand %p1932_p8, %p1926_p5 }
  0x30   :  { %1936 = shalt.err (!%p1933_p9)
}
  0x31   :  { %s1968_s0 = smov 128   ;;  %s1969_s21 = smov 8  }
  0x32   :  { %44 = dma.hbm_to_vmem [thread:$0]  %s2160_s2, 22528, %s39_s17, [#allocation6], %s1968_s0, %s1968_s0, %s1969_s21  }
  0x33   :  { %1959 = dma.done.wait [#allocation3], 768  }
  0x34   :  { %1960 = vsyncadd [#allocation3], 4294966528 }
  0x35   :  { %1961 = dma.done.wait [#allocation6], 22656  }
  0x36   :  { %1962 = vsyncadd [#allocation6], 4294944640  ;;  %v74_v0 = vld [vmem:[#allocation7 + $0x80] sm:$0xff]  ;;  %v75_v1 = vld [vmem:[#allocation7 + $0x88] sm:$0xff]  ;;  %vm1971_vm0 = vmmov 0   ;;  %vm1028_vm1 = vcmask 64512  }
  0x37   :  { %v58_v2 = vld [vmem:[#allocation7] sm:$0xff]  ;;  %v1616_v3 = vpack.c.bf16 %v75_v1, %v74_v0  ;;  %v59_v4 = vld [vmem:[#allocation7 + $0x8] sm:$0xff]  ;;  %v76_v11 = vld [vmem:[#allocation7 + $0x90] sm:$0xff]  ;;  %vm1201_vm3 = vcmask 0  }
  0x38   :  { %v106_v5 = vld [vmem:[#allocation7 + $0x180] sm:$0xff]  ;;  %v107_v6 = vld [vmem:[#allocation7 + $0x188] sm:$0xff]  ;;  %v1618_v7 = vpack.c.bf16 %v59_v4, %v58_v2  ;;  %v77_v13 = vld [vmem:[#allocation7 + $0x98] sm:$0xff] }
  0x39   :  { %v1648_v8 = vpack.c.bf16 %v107_v6, %v106_v5  ;;  %v90_v9 = vld [vmem:[#allocation7 + $0x100] sm:$0xff]  ;;  %v91_v10 = vld [vmem:[#allocation7 + $0x108] sm:$0xff]  ;;  %1617 = vmatprep.subr.bf16.mxu0 %v1616_v3  ;;  %v60_v14 = vld [vmem:[#allocation7 + $0x10] sm:$0xff]  ;;  %v1620_v16 = vpack.c.bf16 %v77_v13, %v76_v11 }
  0x3a   :  { %v1650_v12 = vpack.c.bf16 %v91_v10, %v90_v9  ;;  %v61_v15 = vld [vmem:[#allocation7 + $0x18] sm:$0xff]  ;;  %1619 = vmatpush3.bf16.msra.mxu0 %v1618_v7  ;;  %v108_v18 = vld [vmem:[#allocation7 + $0x190] sm:$0xff]  ;;  %v78_v23 = vld [vmem:[#allocation7 + $0xa0] sm:$0xff] }
  0x3b   :  { %1649 = vmatprep.subr.bf16.mxu1 %v1648_v8  ;;  %v1622_v17 = vpack.c.bf16 %v61_v15, %v60_v14  ;;  %v109_v19 = vld [vmem:[#allocation7 + $0x198] sm:$0xff]  ;;  %v92_v20 = vld [vmem:[#allocation7 + $0x110] sm:$0xff]  ;;  %v79_v24 = vld [vmem:[#allocation7 + $0xa8] sm:$0xff]  ;;  %1621 = vmatprep.subr.bf16.mxu0 %v1620_v16 }
  0x3c   :  { %1651 = vmatpush3.bf16.msra.mxu1 %v1650_v12  ;;  %v1652_v21 = vpack.c.bf16 %v109_v19, %v108_v18  ;;  %v93_v22 = vld [vmem:[#allocation7 + $0x118] sm:$0xff]  ;;  %v1624_v26 = vpack.c.bf16 %v79_v24, %v78_v23  ;;  %v62_v27 = vld [vmem:[#allocation7 + $0x20] sm:$0xff]  ;;  %v63_v28 = vld [vmem:[#allocation7 + $0x28] sm:$0xff] }
  0x3d   :  { %v1654_v25 = vpack.c.bf16 %v93_v22, %v92_v20  ;;  %v110_v29 = vld [vmem:[#allocation7 + $0x1a0] sm:$0xff]  ;;  %v111_v30 = vld [vmem:[#allocation7 + $0x1a8] sm:$0xff]  ;;  %v1626_v33 = vpack.c.bf16 %v63_v28, %v62_v27  ;;  %v80_v35 = vld [vmem:[#allocation7 + $0xb0] sm:$0xff] }
  0x3e   :  { %1653 = vmatprep.subr.bf16.mxu1 %v1652_v21  ;;  %v94_v31 = vld [vmem:[#allocation7 + $0x120] sm:$0xff]  ;;  %v95_v32 = vld [vmem:[#allocation7 + $0x128] sm:$0xff]  ;;  %1623 = vmatpush3.bf16.msra.mxu0 %v1622_v17  ;;  %v1656_v34 = vpack.c.bf16 %v111_v30, %v110_v29  ;;  %v81_v36 = vld [vmem:[#allocation7 + $0xb8] sm:$0xff] }
  0x3f   :  { %v64_v37 = vld [vmem:[#allocation7 + $0x30] sm:$0xff]  ;;  %1625 = vmatprep.subr.bf16.mxu0 %v1624_v26  ;;  %v1658_v38 = vpack.c.bf16 %v95_v32, %v94_v31  ;;  %v1628_v39 = vpack.c.bf16 %v81_v36, %v80_v35  ;;  %v65_v40 = vld [vmem:[#allocation7 + $0x38] sm:$0xff]  ;;  %v82_v46 = vld [vmem:[#allocation7 + $0xc0] sm:$0xff] }
  0x40   :  { %1655 = vmatpush3.bf16.msra.mxu1 %v1654_v25  ;;  %v112_v41 = vld [vmem:[#allocation7 + $0x1b0] sm:$0xff]  ;;  %v113_v42 = vld [vmem:[#allocation7 + $0x1b8] sm:$0xff]  ;;  %v83_v47 = vld [vmem:[#allocation7 + $0xc8] sm:$0xff]  ;;  %v1630_v48 = vpack.c.bf16 %v65_v40, %v64_v37 }
  0x41   :  { %1657 = vmatprep.subr.bf16.mxu1 %v1656_v34  ;;  %v1660_v43 = vpack.c.bf16 %v113_v42, %v112_v41  ;;  %v96_v44 = vld [vmem:[#allocation7 + $0x130] sm:$0xff]  ;;  %v97_v45 = vld [vmem:[#allocation7 + $0x138] sm:$0xff]  ;;  %v114_v49 = vld [vmem:[#allocation7 + $0x1c0] sm:$0xff]  ;;  %v1632_v52 = vpack.c.bf16 %v83_v47, %v82_v46 }
  0x42   :  { %1627 = vmatpush3.bf16.msra.mxu0 %v1626_v33  ;;  %v115_v50 = vld [vmem:[#allocation7 + $0x1c8] sm:$0xff]  ;;  %v1662_v51 = vpack.c.bf16 %v97_v45, %v96_v44  ;;  %v66_v53 = vld [vmem:[#allocation7 + $0x40] sm:$0xff]  ;;  %v84_v58 = vld [vmem:[#allocation7 + $0xd0] sm:$0xff] }
  0x43   :  { %1629 = vmatprep.subr.bf16.mxu0 %v1628_v39  ;;  %v67_v54 = vld [vmem:[#allocation7 + $0x48] sm:$0xff]  ;;  %v98_v55 = vld [vmem:[#allocation7 + $0x140] sm:$0xff]  ;;  %v1664_v56 = vpack.c.bf16 %v115_v50, %v114_v49  ;;  %v85_v59 = vld [vmem:[#allocation7 + $0xd8] sm:$0xff] }
  0x44   :  { %1659 = vmatpush3.bf16.msra.mxu1 %v1658_v38  ;;  %v99_v57 = vld [vmem:[#allocation7 + $0x148] sm:$0xff]  ;;  %v116_v60 = vld [vmem:[#allocation7 + $0x1d0] sm:$0xff]  ;;  %v117_v61 = vld [vmem:[#allocation7 + $0x1d8] sm:$0xff]  ;;  %v1634_v62 = vpack.c.bf16 %v67_v54, %v66_v53  ;;  %v1636_v0 = vpack.c.bf16 %v85_v59, %v84_v58 }
  0x45   :  { %1661 = vmatprep.subr.bf16.mxu1 %v1660_v43  ;;  %v1666_v63 = vpack.c.bf16 %v99_v57, %v98_v55  ;;  %v68_v1 = vld [vmem:[#allocation7 + $0x50] sm:$0xff]  ;;  %v69_v2 = vld [vmem:[#allocation7 + $0x58] sm:$0xff]  ;;  %v1668_v4 = vpack.c.bf16 %v117_v61, %v116_v60  ;;  %v86_v6 = vld [vmem:[#allocation7 + $0xe0] sm:$0xff] }
  0x46   :  { %1631 = vmatpush3.bf16.msra.mxu0 %v1630_v48  ;;  %v100_v3 = vld [vmem:[#allocation7 + $0x150] sm:$0xff]  ;;  %v101_v5 = vld [vmem:[#allocation7 + $0x158] sm:$0xff]  ;;  %v87_v7 = vld [vmem:[#allocation7 + $0xe8] sm:$0xff]  ;;  %v1638_v10 = vpack.c.bf16 %v69_v2, %v68_v1 }
  0x47   :  { %1633 = vmatprep.subr.bf16.mxu0 %v1632_v52  ;;  %v118_v8 = vld [vmem:[#allocation7 + $0x1e0] sm:$0xff]  ;;  %v119_v9 = vld [vmem:[#allocation7 + $0x1e8] sm:$0xff]  ;;  %v245_v12 = vld [vmem:[#allocation2 + $0x8] sm:$0xff]  ;;  %v1670_v13 = vpack.c.bf16 %v101_v5, %v100_v3  ;;  %v1640_v14 = vpack.c.bf16 %v87_v7, %v86_v6 }
  0x48   :  { %1663 = vmatpush3.bf16.msra.mxu1 %v1662_v51  ;;  %v70_v11 = vld [vmem:[#allocation7 + $0x60] sm:$0xff]  ;;  %v71_v15 = vld [vmem:[#allocation7 + $0x68] sm:$0xff]  ;;  %v1672_v18 = vpack.c.bf16 %v119_v9, %v118_v8  ;;  %v88_v19 = vld [vmem:[#allocation7 + $0xf0] sm:$0xff]  ;;  %318 = vmatprep.mubr.f32.mxu0 %v245_v12 }
  0x49   :  { %1665 = vmatprep.subr.bf16.mxu1 %v1664_v56  ;;  %v102_v16 = vld [vmem:[#allocation7 + $0x160] sm:$0xff]  ;;  %v103_v17 = vld [vmem:[#allocation7 + $0x168] sm:$0xff]  ;;  %v89_v20 = vld [vmem:[#allocation7 + $0xf8] sm:$0xff]  ;;  %v1642_v24 = vpack.c.bf16 %v71_v15, %v70_v11 }
  0x4a   :  { %1635 = vmatpush3.bf16.msra.mxu0 %v1634_v62  ;;  %v247_v21 = vld [vmem:[#allocation2 + $0x18] sm:$0xff]  ;;  %v120_v22 = vld [vmem:[#allocation7 + $0x1f0] sm:$0xff]  ;;  %v121_v23 = vld [vmem:[#allocation7 + $0x1f8] sm:$0xff]  ;;  %v1674_v25 = vpack.c.bf16 %v103_v17, %v102_v16  ;;  %v1644_v26 = vpack.c.bf16 %v89_v20, %v88_v19 }
  0x4b   :  { %1637 = vmatprep.subr.bf16.mxu0 %v1636_v0  ;;  %388 = vmatprep.mubr.f32.mxu1 %v247_v21  ;;  %v72_v27 = vld [vmem:[#allocation7 + $0x70] sm:$0xff]  ;;  %v73_v28 = vld [vmem:[#allocation7 + $0x78] sm:$0xff]  ;;  %v1676_v30 = vpack.c.bf16 %v121_v23, %v120_v22  ;;  %v138_v32 = vld [vmem:[#allocation7 + $0x280] sm:$0xff] }
  0x4c   :  { %1667 = vmatpush3.bf16.msra.mxu1 %v1666_v63  ;;  %v104_v29 = vld [vmem:[#allocation7 + $0x170] sm:$0xff]  ;;  %v105_v31 = vld [vmem:[#allocation7 + $0x178] sm:$0xff]  ;;  %v139_v33 = vld [vmem:[#allocation7 + $0x288] sm:$0xff]  ;;  %v1646_v34 = vpack.c.bf16 %v73_v28, %v72_v27 }
  0x4d   :  { %1669 = vmatprep.subr.bf16.mxu1 %v1668_v4  ;;  %v1678_v35 = vpack.c.bf16 %v105_v31, %v104_v29  ;;  %v1680_v36 = vpack.c.bf16 %v139_v33, %v138_v32  ;;  %v122_v37 = vld [vmem:[#allocation7 + $0x200] sm:$0xff]  ;;  %v123_v38 = vld [vmem:[#allocation7 + $0x208] sm:$0xff]  ;;  %v140_v39 = vld [vmem:[#allocation7 + $0x290] sm:$0xff] }
  0x4e   :  { %1639 = vmatpush3.bf16.msra.mxu0 %v1638_v10  ;;  %v141_v40 = vld [vmem:[#allocation7 + $0x298] sm:$0xff]  ;;  %v244_v41 = vld [vmem:[#allocation2] sm:$0xff]  ;;  %v1682_v42 = vpack.c.bf16 %v123_v38, %v122_v37  ;;  %v124_v45 = vld [vmem:[#allocation7 + $0x210] sm:$0xff] }
  0x4f   :  { %1641 = vmatprep.subr.bf16.mxu0 %v1640_v14  ;;  %v246_v43 = vld [vmem:[#allocation2 + $0x10] sm:$0xff]  ;;  %v1684_v44 = vpack.c.bf16 %v141_v40, %v140_v39  ;;  %v142_v47 = vld [vmem:[#allocation7 + $0x2a0] sm:$0xff]  ;;  %v143_v48 = vld [vmem:[#allocation7 + $0x2a8] sm:$0xff] }
  0x50   :  { %1671 = vmatpush3.bf16.msra.mxu1 %v1670_v13  ;;  %v125_v46 = vld [vmem:[#allocation7 + $0x218] sm:$0xff]  ;;  %v249_v49 = vld [vmem:[#allocation2 + $0x28] sm:$0xff]  ;;  %v1688_v51 = vpack.c.bf16 %v143_v48, %v142_v47  ;;  %v126_v52 = vld [vmem:[#allocation7 + $0x220] sm:$0xff] }
  0x51   :  { %1673 = vmatprep.subr.bf16.mxu1 %v1672_v18  ;;  %v1686_v50 = vpack.c.bf16 %v125_v46, %v124_v45  ;;  %v127_v53 = vld [vmem:[#allocation7 + $0x228] sm:$0xff]  ;;  %v144_v54 = vld [vmem:[#allocation7 + $0x2b0] sm:$0xff]  ;;  %v145_v55 = vld [vmem:[#allocation7 + $0x2b8] sm:$0xff]  ;;  %v1972_v46 = vmov 0.0  }
  0x52   :  { %1643 = vmatpush3.bf16.msra.mxu0 %v1642_v24  ;;  %v1690_v56 = vpack.c.bf16 %v127_v53, %v126_v52  ;;  %v1692_v57 = vpack.c.bf16 %v145_v55, %v144_v54  ;;  %v128_v58 = vld [vmem:[#allocation7 + $0x230] sm:$0xff]  ;;  %v129_v59 = vld [vmem:[#allocation7 + $0x238] sm:$0xff]  ;;  %v146_v60 = vld [vmem:[#allocation7 + $0x2c0] sm:$0xff] }
  0x53   :  { %1645 = vmatprep.subr.bf16.mxu0 %v1644_v26  ;;  %v147_v61 = vld [vmem:[#allocation7 + $0x2c8] sm:$0xff]  ;;  %v1694_v62 = vpack.c.bf16 %v129_v59, %v128_v58  ;;  %v130_v0 = vld [vmem:[#allocation7 + $0x240] sm:$0xff]  ;;  %v148_v2 = vld [vmem:[#allocation7 + $0x2d0] sm:$0xff] }
  0x54   :  { %1675 = vmatpush3.bf16.msra.mxu1 %v1674_v25  ;;  %v1696_v63 = vpack.c.bf16 %v147_v61, %v146_v60  ;;  %v131_v1 = vld [vmem:[#allocation7 + $0x248] sm:$0xff]  ;;  %v149_v3 = vld [vmem:[#allocation7 + $0x2d8] sm:$0xff]  ;;  %v132_v6 = vld [vmem:[#allocation7 + $0x250] sm:$0xff]  ;;  %v1970_v25 = vmov 0.0|0.0  }
  0x55   :  { %1677 = vmatprep.subr.bf16.mxu1 %v1676_v30  ;;  %v1698_v4 = vpack.c.bf16 %v131_v1, %v130_v0  ;;  %v1700_v5 = vpack.c.bf16 %v149_v3, %v148_v2  ;;  %v133_v7 = vld [vmem:[#allocation7 + $0x258] sm:$0xff]  ;;  %v150_v8 = vld [vmem:[#allocation7 + $0x2e0] sm:$0xff]  ;;  %v151_v9 = vld [vmem:[#allocation7 + $0x2e8] sm:$0xff] }
  0x56   :  { %1647 = vmatpush3.bf16.msra.mxu0 %v1646_v34  ;;  %v1702_v10 = vpack.c.bf16 %v133_v7, %v132_v6  ;;  %v1704_v11 = vpack.c.bf16 %v151_v9, %v150_v8  ;;  %v134_v12 = vld [vmem:[#allocation7 + $0x260] sm:$0xff]  ;;  %v135_v13 = vld [vmem:[#allocation7 + $0x268] sm:$0xff]  ;;  %v152_v14 = vld [vmem:[#allocation7 + $0x2f0] sm:$0xff] }
  0x57   :  { %1681 = vmatprep.subr.bf16.mxu0 %v1680_v36  ;;  %v153_v15 = vld [vmem:[#allocation7 + $0x2f8] sm:$0xff]  ;;  %v1706_v16 = vpack.c.bf16 %v135_v13, %v134_v12  ;;  %v136_v18 = vld [vmem:[#allocation7 + $0x270] sm:$0xff]  ;;  %v248_v21 = vld [vmem:[#allocation2 + $0x20] sm:$0xff] }
  0x58   :  { %1679 = vmatpush3.bf16.msra.mxu1 %v1678_v35  ;;  %v1708_v17 = vpack.c.bf16 %v153_v15, %v152_v14  ;;  %v137_v19 = vld [vmem:[#allocation7 + $0x278] sm:$0xff]  ;;  %v154_v22 = vld [vmem:[#allocation7 + $0x300] sm:$0xff]  ;;  %v155_v23 = vld [vmem:[#allocation7 + $0x308] sm:$0xff] }
  0x59   :  { %319 = vmatmul.mubr.f32.vlgmr.msra.gmra.mrb[0].mxu0 %v244_v41  ;;  %v1710_v20 = vpack.c.bf16 %v137_v19, %v136_v18  ;;  %v156_v24 = vld [vmem:[#allocation7 + $0x310] sm:$0xff]  ;;  %1712 = vmatprep.subr.bf16.mxu1 %v1970_v25  ;;  %v1713_v26 = vpack.c.bf16 %v155_v23, %v154_v22  ;;  %v157_v27 = vld [vmem:[#allocation7 + $0x318] sm:$0xff]  ;;  %v158_v29 = vld [vmem:[#allocation7 + $0x320] sm:$0xff] }
  0x5a   :  { %1683 = vmatpush3.bf16.msra.mxu0 %v1682_v42  ;;  %458 = vmatprep.mubr.f32.mxu0 %v249_v49  ;;  %v1716_v28 = vpack.c.bf16 %v157_v27, %v156_v24  ;;  %v159_v30 = vld [vmem:[#allocation7 + $0x328] sm:$0xff]  ;;  %v160_v32 = vld [vmem:[#allocation7 + $0x330] sm:$0xff]  ;;  %v161_v33 = vld [vmem:[#allocation7 + $0x338] sm:$0xff] }
  0x5b   :  { %389 = vmatmul.mubr.f32.vlgmr.msra.gmra.mrb[0].mxu1 %v246_v43  ;;  %1685 = vmatprep.subr.bf16.mxu0 %v1684_v44  ;;  %v1719_v31 = vpack.c.bf16 %v159_v30, %v158_v29  ;;  %v1722_v34 = vpack.c.bf16 %v161_v33, %v160_v32  ;;  %v162_v35 = vld [vmem:[#allocation7 + $0x340] sm:$0xff]  ;;  %v163_v36 = vld [vmem:[#allocation7 + $0x348] sm:$0xff]  ;;  %v164_v38 = vld [vmem:[#allocation7 + $0x350] sm:$0xff] }
  0x5c   :  { %1714 = vmatpush3.bf16.msra.mxu1 %v1713_v26  ;;  %v1725_v37 = vpack.c.bf16 %v163_v36, %v162_v35  ;;  %v165_v39 = vld [vmem:[#allocation7 + $0x358] sm:$0xff]  ;;  %v166_v41 = vld [vmem:[#allocation7 + $0x360] sm:$0xff]  ;;  %v167_v42 = vld [vmem:[#allocation7 + $0x368] sm:$0xff]  ;;  %1458 = vmatprep.mubr.msk.f32.mxu1 %vm1971_vm0, %v1972_v46 }
  0x5d   :  { %1715 = vmatprep.subr.bf16.mxu1 %v1970_v25  ;;  %v1728_v40 = vpack.c.bf16 %v165_v39, %v164_v38  ;;  %v168_v43 = vld [vmem:[#allocation7 + $0x370] sm:$0xff]  ;;  %v1731_v44 = vpack.c.bf16 %v167_v42, %v166_v41  ;;  %v169_v45 = vld [vmem:[#allocation7 + $0x378] sm:$0xff]  ;;  %v170_v48 = vld [vmem:[#allocation7 + $0x380] sm:$0xff] }
  0x5e   :  { %1687 = vmatpush3.bf16.msra.mxu0 %v1686_v50  ;;  %v1734_v47 = vpack.c.bf16 %v169_v45, %v168_v43  ;;  %v171_v49 = vld [vmem:[#allocation7 + $0x388] sm:$0xff]  ;;  %v172_v50 = vld [vmem:[#allocation7 + $0x390] sm:$0xff]  ;;  %v173_v52 = vld [vmem:[#allocation7 + $0x398] sm:$0xff] }
  0x5f   :  { %1689 = vmatprep.subr.bf16.mxu0 %v1688_v51  ;;  %v1737_v51 = vpack.c.bf16 %v171_v49, %v170_v48  ;;  %v1740_v53 = vpack.c.bf16 %v173_v52, %v172_v50  ;;  %v174_v54 = vld [vmem:[#allocation7 + $0x3a0] sm:$0xff]  ;;  %v175_v55 = vld [vmem:[#allocation7 + $0x3a8] sm:$0xff]  ;;  %v188_v9 = vld [vmem:[#allocation7 + $0x410] sm:$0xff] }
  0x60   :  { %1717 = vmatpush3.bf16.msra.mxu1 %v1716_v28  ;;  %v1219_v58 = vld [vmem:[%s2161_s3] ss:$0 sm:$0xff]  ;;  %v186_v6 = vld [vmem:[#allocation7 + $0x400] sm:$0xff]  ;;  %v196_v22 = vld [vmem:[#allocation7 + $0x450] sm:$0xff] }
  0x61   :  { %1718 = vmatprep.subr.bf16.mxu1 %v1970_v25  ;;  %v187_v7 = vld [vmem:[#allocation7 + $0x408] sm:$0xff]  ;;  %v190_v13 = vld [vmem:[#allocation7 + $0x420] sm:$0xff]  ;;  %v197_v23 = vld [vmem:[#allocation7 + $0x458] sm:$0xff] }
  0x62   :  { %1691 = vmatpush3.bf16.msra.mxu0 %v1690_v56  ;;  %v1743_v56 = vpack.c.bf16 %v175_v55, %v174_v54  ;;  %v1761_v8 = vpack.c.bf16 %v187_v7, %v186_v6  ;;  %v191_v14 = vld [vmem:[#allocation7 + $0x428] sm:$0xff]  ;;  %v194_v19 = vld [vmem:[#allocation7 + $0x440] sm:$0xff]  ;;  %v1776_v24 = vpack.c.bf16 %v197_v23, %v196_v22  ;;  %v200_v29 = vld [vmem:[#allocation7 + $0x470] sm:$0xff] }
  0x63   :  { %1693 = vmatprep.subr.bf16.mxu0 %v1692_v57  ;;  %v1767_v15 = vpack.c.bf16 %v191_v14, %v190_v13  ;;  %v198_v26 = vld [vmem:[#allocation7 + $0x460] sm:$0xff]  ;;  %v199_v27 = vld [vmem:[#allocation7 + $0x468] sm:$0xff]  ;;  %v201_v30 = vld [vmem:[#allocation7 + $0x478] sm:$0xff] }
  0x64   :  { %1720 = vmatpush3.bf16.msra.mxu1 %v1719_v31  ;;  %v1779_v28 = vpack.c.bf16 %v199_v27, %v198_v26  ;;  %v1782_v31 = vpack.c.bf16 %v201_v30, %v200_v29  ;;  %v641_v32 = vld [vmem:[#allocation5] sm:$0xff]  ;;  %v176_v33 = vld [vmem:[#allocation7 + $0x3b0] sm:$0xff]  ;;  %v178_v36 = vld [vmem:[#allocation7 + $0x3c0] sm:$0xff] }
  0x65   :  { %1721 = vmatprep.subr.bf16.mxu1 %v1970_v25  ;;  %v180_v39 = vld [vmem:[#allocation7 + $0x3d0] sm:$0xff]  ;;  %v182_v42 = vld [vmem:[#allocation7 + $0x3e0] sm:$0xff]  ;;  %v183_v43 = vld [vmem:[#allocation7 + $0x3e8] sm:$0xff] }
  0x66   :  { %1695 = vmatpush3.bf16.msra.mxu0 %v1694_v62  ;;  %v184_v45 = vld [vmem:[#allocation7 + $0x3f0] sm:$0xff]  ;;  %v1220_v49 = vld [vmem:[%s2161_s3 + $0x1] ss:$0 sm:$0xff]  ;;  %v202_v54 = vld [vmem:[#allocation7 + $0x480] sm:$0xff] }
  0x67   :  { %1697 = vmatprep.subr.bf16.mxu0 %v1696_v63  ;;  %v203_v55 = vld [vmem:[#allocation7 + $0x488] sm:$0xff]  ;;  %v210_v7 = vld [vmem:[#allocation7 + $0x4c0] sm:$0xff]  ;;  %v212_v13 = vld [vmem:[#allocation7 + $0x4d0] sm:$0xff] }
  0x68   :  { %1723 = vmatpush3.bf16.msra.mxu1 %v1722_v34  ;;  %v177_v34 = vld [vmem:[#allocation7 + $0x3b8] sm:$0xff]  ;;  %v1224_v6 = vld [vmem:[%s2161_s3 + $0x5] ss:$0 sm:$0xff]  ;;  %v1225_v30 = vld [vmem:[%s2161_s3 + $0x6] ss:$0 sm:$0xff] }
  0x69   :  { %1724 = vmatprep.subr.bf16.mxu1 %v1970_v25  ;;  %v1746_v35 = vpack.c.bf16 %v177_v34, %v176_v33  ;;  %v213_v14 = vld [vmem:[#allocation7 + $0x4d8] sm:$0xff] }
  0x6a   :  { %1699 = vmatpush3.bf16.msra.mxu0 %v1698_v4 }
  0x6b   :  { %1701 = vmatprep.subr.bf16.mxu0 %v1700_v5 }
  0x6c   :  { %1726 = vmatpush3.bf16.msra.mxu1 %v1725_v37  ;;  %v179_v37 = vld [vmem:[#allocation7 + $0x3c8] sm:$0xff] }
  0x6d   :  { %1727 = vmatprep.subr.bf16.mxu1 %v1970_v25  ;;  %v1749_v38 = vpack.c.bf16 %v179_v37, %v178_v36 }
  0x6e   :  { %1703 = vmatpush3.bf16.msra.mxu0 %v1702_v10  ;;  %v189_v10 = vld [vmem:[#allocation7 + $0x418] sm:$0xff] }
  0x6f   :  { %1705 = vmatprep.subr.bf16.mxu0 %v1704_v11  ;;  %v1764_v12 = vpack.c.bf16 %v189_v10, %v188_v9 }
  0x70   :  { %1729 = vmatpush3.bf16.msra.mxu1 %v1728_v40  ;;  %v181_v40 = vld [vmem:[#allocation7 + $0x3d8] sm:$0xff] }
  0x71   :  { %1730 = vmatprep.subr.bf16.mxu1 %v1970_v25  ;;  %v1752_v41 = vpack.c.bf16 %v181_v40, %v180_v39 }
  0x72   :  { %1707 = vmatpush3.bf16.msra.mxu0 %v1706_v16  ;;  %v192_v16 = vld [vmem:[#allocation7 + $0x430] sm:$0xff] }
  0x73   :  { %1709 = vmatprep.subr.bf16.mxu0 %v1708_v17  ;;  %v193_v17 = vld [vmem:[#allocation7 + $0x438] sm:$0xff] }
  0x74   :  { %1732 = vmatpush3.bf16.msra.mxu1 %v1731_v44  ;;  %v1770_v18 = vpack.c.bf16 %v193_v17, %v192_v16  ;;  %v1755_v44 = vpack.c.bf16 %v183_v43, %v182_v42  ;;  %v1800_v16 = vpack.c.bf16 %v213_v14, %v212_v13  ;;  %v214_v17 = vld [vmem:[#allocation7 + $0x4e0] sm:$0xff]  ;;  %v227_v14 = vld [vmem:[#allocation7 + $0x548] sm:$0xff] }
  0x75   :  { %1733 = vmatprep.subr.bf16.mxu1 %v1970_v25  ;;  %v226_v13 = vld [vmem:[#allocation7 + $0x540] sm:$0xff] }
  0x76   :  { %1711 = vmatpush3.bf16.msra.mxu0 %v1710_v20  ;;  %v195_v20 = vld [vmem:[#allocation7 + $0x448] sm:$0xff] }
  0x77   :  { %1736 = vmatprep.subr.bf16.mxu0 %v1970_v25 }
  0x78   :  { %1735 = vmatpush3.bf16.msra.mxu1 %v1734_v47  ;;  %v185_v47 = vld [vmem:[#allocation7 + $0x3f8] sm:$0xff] }
  0x79   :  { %459 = vmatmul.mubr.f32.vlgmr.msra.gmra.mrb[2].mxu0 %v248_v21  ;;  %1760 = vmatprep.subr.bf16.mxu1 %v1970_v25  ;;  %v1773_v21 = vpack.c.bf16 %v195_v20, %v194_v19  ;;  %v1758_v48 = vpack.c.bf16 %v185_v47, %v184_v45  ;;  %v216_v20 = vld [vmem:[#allocation7 + $0x4f0] sm:$0xff] }
  0x7a   :  { %1493 = vmatprep.mubr.msk.f32.mxu0 %vm1971_vm0, %v1972_v46  ;;  %1738 = vmatpush3.bf16.msra.mxu0 %v1737_v51 }
  0x7b   :  { %1739 = vmatprep.subr.bf16.mxu0 %v1970_v25 }
  0x7e   :  { %1741 = vmatpush3.bf16.msra.mxu0 %v1740_v53 }
  0x7f   :  { %1742 = vmatprep.subr.bf16.mxu0 %v1970_v25 }
  0x82   :  { %1744 = vmatpush3.bf16.msra.mxu0 %v1743_v56 }
  0x83   :  { %1745 = vmatprep.subr.bf16.mxu0 %v1970_v25 }
  0x86   :  { %1747 = vmatpush3.bf16.msra.mxu0 %v1746_v35 }
  0x87   :  { %1748 = vmatprep.subr.bf16.mxu0 %v1970_v25 }
  0x8a   :  { %1750 = vmatpush3.bf16.msra.mxu0 %v1749_v38 }
  0x8b   :  { %1751 = vmatprep.subr.bf16.mxu0 %v1970_v25 }
  0x8e   :  { %1753 = vmatpush3.bf16.msra.mxu0 %v1752_v41 }
  0x8f   :  { %1754 = vmatprep.subr.bf16.mxu0 %v1970_v25 }
  0x92   :  { %1756 = vmatpush3.bf16.msra.mxu0 %v1755_v44 }
  0x93   :  { %1757 = vmatprep.subr.bf16.mxu0 %v1970_v25 }
  0x96   :  { %1759 = vmatpush3.bf16.msra.mxu0 %v1758_v48 }
  0x97   :  { %1784 = vmatprep.subr.bf16.mxu0 %v1970_v25 }
 0x12c   :  { %v1262_v57 = vpop.f32.mrb[0].mxu0 }
 0x12d   :  { %v1263_v59 = vpop.f32.mrb[1].mxu0 }
 0x12e   :  { %v1297_v60 = vpop.f32.mrb[0].mxu1  ;;  %v1264_v61 = vadd.f32 %v1263_v59, %v1262_v57  ;;  %v1785_v59 = vpack.c.bf16 %v203_v55, %v202_v54  ;;  %v1226_v54 = vld [vmem:[%s2161_s3 + $0x7] ss:$0 sm:$0xff] }
 0x12f   :  { %v1298_v62 = vpop.f32.mrb[1].mxu1 }
 0x130   :  { %v1299_v63 = vadd.f32 %v1298_v62, %v1297_v60  ;;  %v321_v0 = vadd.f32 %v1264_v61, %v1219_v58  ;;  %v204_v61 = vld [vmem:[#allocation7 + $0x490] sm:$0xff]  ;;  %v205_v62 = vld [vmem:[#allocation7 + $0x498] sm:$0xff] }
 0x132   :  { %v391_v1 = vadd.f32 %v1299_v63, %v321_v0  ;;  %v1788_v63 = vpack.c.bf16 %v205_v62, %v204_v61  ;;  %v206_v0 = vld [vmem:[#allocation7 + $0x4a0] sm:$0xff]  ;;  %v1223_v62 = vld [vmem:[%s2161_s3 + $0x4] ss:$0 sm:$0xff] }
 0x14c   :  { %v1332_v2 = vpop.f32.mrb[2].mxu0 }
 0x14d   :  { %v1333_v3 = vpop.f32.mrb[3].mxu0 }
 0x14e   :  { %v1334_v4 = vadd.f32 %v1333_v3, %v1332_v2  ;;  %v208_v3 = vld [vmem:[#allocation7 + $0x4b0] sm:$0xff] }
 0x150   :  { %v461_v5 = vadd.f32 %v1334_v4, %v391_v1  ;;  %v207_v1 = vld [vmem:[#allocation7 + $0x4a8] sm:$0xff]  ;;  %v209_v4 = vld [vmem:[#allocation7 + $0x4b8] sm:$0xff] }
 0x151   :  { %v1791_v2 = vpack.c.bf16 %v207_v1, %v206_v0  ;;  %v218_v1 = vld [vmem:[#allocation7 + $0x500] sm:$0xff] }
 0x152   :  { %1845 = vtanh.f32 %v461_v5  ;;  %v1794_v5 = vpack.c.bf16 %v209_v4, %v208_v3  ;;  %v220_v4 = vld [vmem:[#allocation7 + $0x510] sm:$0xff] }
 0x15c   :  { %v1846_v11 = vpop.eup %1845 }
 0x15d   :  { %1459 = vmatmul.mubr.f32.vlgmr.msra.gmra.mrb[2].mxu1 %v1846_v11 }
 0x15e   :  { %1762 = vmatpush3.bf16.msra.mxu1 %v1761_v8  ;;  %1528 = vmatprep.mubr.msk.f32.mxu1 %vm1971_vm0, %v1972_v46  ;;  %v211_v8 = vld [vmem:[#allocation7 + $0x4c8] sm:$0xff] }
 0x15f   :  { %1763 = vmatprep.subr.bf16.mxu1 %v1970_v25 }
 0x162   :  { %1765 = vmatpush3.bf16.msra.mxu1 %v1764_v12  ;;  %v1797_v12 = vpack.c.bf16 %v211_v8, %v210_v7  ;;  %v222_v7 = vld [vmem:[#allocation7 + $0x520] sm:$0xff]  ;;  %v223_v8 = vld [vmem:[#allocation7 + $0x528] sm:$0xff] }
 0x163   :  { %1766 = vmatprep.subr.bf16.mxu1 %v1970_v25 }
 0x166   :  { %1768 = vmatpush3.bf16.msra.mxu1 %v1767_v15 }
 0x167   :  { %1769 = vmatprep.subr.bf16.mxu1 %v1970_v25 }
 0x16a   :  { %1771 = vmatpush3.bf16.msra.mxu1 %v1770_v18  ;;  %v215_v18 = vld [vmem:[#allocation7 + $0x4e8] sm:$0xff] }
 0x16b   :  { %1772 = vmatprep.subr.bf16.mxu1 %v1970_v25  ;;  %v1803_v19 = vpack.c.bf16 %v215_v18, %v214_v17  ;;  %v229_v17 = vld [vmem:[#allocation7 + $0x558] sm:$0xff] }
 0x16e   :  { %1774 = vmatpush3.bf16.msra.mxu1 %v1773_v21  ;;  %v217_v21 = vld [vmem:[#allocation7 + $0x4f8] sm:$0xff] }
 0x16f   :  { %1775 = vmatprep.subr.bf16.mxu1 %v1970_v25  ;;  %v1806_v22 = vpack.c.bf16 %v217_v21, %v216_v20  ;;  %v231_v20 = vld [vmem:[#allocation7 + $0x568] sm:$0xff] }
 0x172   :  { %1777 = vmatpush3.bf16.msra.mxu1 %v1776_v24 }
 0x173   :  { %1778 = vmatprep.subr.bf16.mxu1 %v1970_v25 }
 0x176   :  { %1780 = vmatpush3.bf16.msra.mxu1 %v1779_v28 }
 0x177   :  { %1781 = vmatprep.subr.bf16.mxu1 %v1970_v25 }
 0x17a   :  { %1783 = vmatpush3.bf16.msra.mxu1 %v1782_v31  ;;  %v1221_v31 = vld [vmem:[%s2161_s3 + $0x2] ss:$0 sm:$0xff] }
 0x17b   :  { %1571 = vmatprep.subr.mxu1 %v1972_v46 }
 0x17d   :  { %1529 = vmatmul.mubr.f32.vlgmr.msra.gmra.mrb[4].mxu1 %v641_v32 }
 0x17e   :  { %1573 = vmatprep.mubr.msk.f32.mxu1 %vm1971_vm0, %v1972_v46 }
 0x230   :  { %v535_v50 = vpop.f32.mrb[2].mxu1 }
 0x231   :  { %v2081_v51 = vadd.f32 %v1220_v49, %v535_v50  ;;  %v1460_v52 = vpop.f32.mrb[3].mxu1 }
 0x233   :  { %v540_v53 = vmul.f32 0.70710677, %v2081_v51  ;;  %v539_v57 = vmul.f32 0.5, %v2081_v51 }
 0x235   :  { %1847 = verf.f32 %v540_v53 }
 0x23f   :  { %v1848_v56 = vpop.eup %1847 }
 0x240   :  { %v542_v58 = vadd.f32 1.0, %v1848_v56  ;;  %v1227_v56 = vld [vmem:[%s2161_s3 + $0x8] ss:$0 sm:$0xff] }
 0x242   :  { %v543_v60 = vmul.f32 %v542_v58, %v539_v57 }
 0x244   :  { %1494 = vmatmul.mubr.f32.vlgmr.msra.gmra.mrb[4].mxu0 %v543_v60 }
 0x245   :  { %1786 = vmatpush3.bf16.msra.mxu0 %v1785_v59  ;;  %1563 = vmatprep.mubr.msk.f32.mxu0 %vm1971_vm0, %v1972_v46  ;;  %v1222_v59 = vld [vmem:[%s2161_s3 + $0x3] ss:$0 sm:$0xff] }
 0x246   :  { %1787 = vmatprep.subr.bf16.mxu0 %v1970_v25 }
 0x249   :  { %1789 = vmatpush3.bf16.msra.mxu0 %v1788_v63 }
 0x24a   :  { %1790 = vmatprep.subr.bf16.mxu0 %v1970_v25 }
 0x24d   :  { %1792 = vmatpush3.bf16.msra.mxu0 %v1791_v2  ;;  %v219_v2 = vld [vmem:[#allocation7 + $0x508] sm:$0xff] }
 0x24e   :  { %1793 = vmatprep.subr.bf16.mxu0 %v1970_v25  ;;  %v1809_v3 = vpack.c.bf16 %v219_v2, %v218_v1 }
 0x250   :  { %v712_v9 = vpop.f32.mrb[4].mxu1 }
 0x251   :  { %v713_v10 = vadd.f32 %v1224_v6, %v712_v9  ;;  %v1530_v11 = vpop.f32.mrb[5].mxu1  ;;  %1795 = vmatpush3.bf16.msra.mxu0 %v1794_v5  ;;  %v221_v5 = vld [vmem:[#allocation7 + $0x518] sm:$0xff]  ;;  %v1815_v9 = vpack.c.bf16 %v223_v8, %v222_v7 }
 0x252   :  { %1796 = vmatprep.subr.bf16.mxu0 %v1970_v25  ;;  %v1812_v6 = vpack.c.bf16 %v221_v5, %v220_v4  ;;  %v225_v11 = vld [vmem:[#allocation7 + $0x538] sm:$0xff] }
 0x253   :  { %v717_v15 = vmul.f32 0.70710677, %v713_v10  ;;  %v716_v24 = vmul.f32 0.5, %v713_v10 }
 0x255   :  { %1849 = verf.f32 %v717_v15  ;;  %1798 = vmatpush3.bf16.msra.mxu0 %v1797_v12  ;;  %v1821_v15 = vpack.c.bf16 %v227_v14, %v226_v13 }
 0x256   :  { %1799 = vmatprep.subr.bf16.mxu0 %v1970_v25 }
 0x259   :  { %1801 = vmatpush3.bf16.msra.mxu0 %v1800_v16  ;;  %v228_v16 = vld [vmem:[#allocation7 + $0x550] sm:$0xff] }
 0x25a   :  { %1802 = vmatprep.subr.bf16.mxu0 %v1970_v25  ;;  %v1824_v18 = vpack.c.bf16 %v229_v17, %v228_v16 }
 0x25d   :  { %1804 = vmatpush3.bf16.msra.mxu0 %v1803_v19  ;;  %v230_v19 = vld [vmem:[#allocation7 + $0x560] sm:$0xff] }
 0x25e   :  { %1805 = vmatprep.subr.bf16.mxu0 %v1970_v25  ;;  %v1827_v21 = vpack.c.bf16 %v231_v20, %v230_v19  ;;  %v1180_v20 = vlaneseq }
 0x25f   :  { %v1850_v23 = vpop.eup %1849 }
 0x260   :  { %v719_v26 = vadd.f32 1.0, %v1850_v23  ;;  %v233_v23 = vld [vmem:[#allocation7 + $0x578] sm:$0xff] }
 0x261   :  { %1807 = vmatpush3.bf16.msra.mxu0 %v1806_v22  ;;  %v232_v22 = vld [vmem:[#allocation7 + $0x570] sm:$0xff] }
 0x262   :  { %v720_v27 = vmul.f32 %v719_v26, %v716_v24  ;;  %1566 = vmatprep.subr.mxu0 %v1972_v46  ;;  %v1830_v24 = vpack.c.bf16 %v233_v23, %v232_v22 }
 0x264   :  { %1564 = vmatmul.mubr.f32.vlgmr.msra.gmra.mrb[6].mxu0 %v720_v27 }
 0x265   :  { %1568 = vmatprep.mubr.msk.f32.mxu0 %vm1971_vm0, %v1972_v46 }
 0x317   :  { %v614_v28 = vpop.f32.mrb[4].mxu0 }
 0x318   :  { %v1495_v29 = vpop.f32.mrb[5].mxu0  ;;  %v615_v35 = vadd.f32 %v1221_v31, %v614_v28 }
 0x31a   :  { %v618_v37 = vadd.f32 %v615_v35, %v2081_v51 }
 0x337   :  { %v791_v32 = vpop.f32.mrb[6].mxu0 }
 0x338   :  { %v792_v33 = vadd.f32 %v1225_v30, %v791_v32  ;;  %v1565_v34 = vpop.f32.mrb[7].mxu0 }
 0x33a   :  { %v795_v36 = vadd.f32 %v792_v33, %v713_v10  ;;  %v224_v10 = vld [vmem:[#allocation7 + $0x530] sm:$0xff] }
 0x33b   :  { %v1818_v12 = vpack.c.bf16 %v225_v11, %v224_v10 }
 0x33c   :  { %796 = vadd.xlane.f32.xlu0 %v795_v36 }
 0x340   :  { %619 = vadd.xlane.f32.xlu0 %v618_v37 }
 0x3c9   :  { %v797_v38 = vpop.xlane.xlu0 %796 }
 0x3ca   :  { %v798_v39 = vmul.f32 0.0078125, %v797_v38 }
 0x3cc   :  { %v799_v40 = vsub.f32 %v795_v36, %v798_v39  ;;  %v1228_v39 = vld [vmem:[%s2161_s3 + $0x9] ss:$0 sm:$0xff] }
 0x3cd   :  { %v620_v41 = vpop.xlane.xlu0 %619 }
 0x3ce   :  { %v622_v42 = vmul.f32 0.0078125, %v620_v41  ;;  %v800_v43 = vmul.f32 %v799_v40, %v799_v40 }
 0x3d0   :  { %v623_v44 = vsub.f32 %v618_v37, %v622_v42  ;;  %801 = vadd.xlane.f32.xlu1 %v800_v43  ;;  %v1973_v43 = vmov 0  }
 0x3d1   :  { %1844 = vset.pattern.permute.xlu0 %v1973_v43 }
 0x3d2   :  { %v624_v45 = vmul.f32 %v623_v44, %v623_v44 }
 0x3d4   :  { %625 = vadd.xlane.f32.xlu1 %v624_v45 }
 0x45d   :  { %v802_v47 = vpop.xlane.xlu1 %801 }
 0x45e   :  { %v803_v48 = vmul.f32 0.0078125, %v802_v47 }
 0x460   :  { %v804_v49 = vadd.f32 1e-05, %v803_v48 }
 0x461   :  { %v626_v50 = vpop.xlane.xlu1 %625 }
 0x462   :  { %1851 = vrsqrt.f32 %v804_v49  ;;  %v627_v52 = vmul.f32 0.0078125, %v626_v50 }
 0x464   :  { %v628_v53 = vadd.f32 1e-05, %v627_v52 }
 0x466   :  { %1853 = vrsqrt.f32 %v628_v53 }
 0x46c   :  { %v1852_v51 = vpop.eup %1851 }
 0x46d   :  { %v806_v55 = vmul.f32 %v1852_v51, %v799_v40 }
 0x46f   :  { %v811_v57 = vmul.f32 %v1226_v54, %v806_v55 }
 0x470   :  { %v1854_v58 = vpop.eup %1853 }
 0x471   :  { %v816_v60 = vadd.f32 %v1227_v56, %v811_v57  ;;  %v630_v61 = vmul.f32 %v1854_v58, %v623_v44  ;;  %v1182_v58 = vld [vmem:[%s2162_s4] sm:$0xff]  ;;  %s1974_s4 = smov [#allocation8]  }
 0x472   :  { %s1209_s24 = sshll.u32 %s1974_s4, 4  ;;  %s1210_s24 = int_to_ptr.vmem [resolvable:$true] %s1209_s24 }
 0x473   :  { %1572 = vmatpush3.xpose.msra.mxu1 %v816_v60  ;;  %v635_v63 = vmul.f32 %v1222_v59, %v630_v61  ;;  %s1937_s25 = scalar_lea.vmem %s1210_s24, 16  ;;  %s1941_s26 = scalar_lea.vmem %s1210_s24, 32 }
 0x474   :  { %1576 = vmatprep.subr.mxu1 %v1972_v46  ;;  %p1938_p10 = scmp.ne.s32.totalorder %s1210_s24, %s1937_s25  ;;  %p1942_p11 = scmp.lt.s32.totalorder %s1210_s24, %s1210_s24 }
 0x475   :  { %v640_v0 = vadd.f32 %v1223_v62, %v635_v63  ;;  %p1943_p12 = scmp.lt.s32.totalorder %s1941_s26, %s1937_s25 }
 0x476   :  { %1574 = vmatmul.mubr.f32.vlgmr.msra.gmra.mrb[6].mxu1 %v816_v60 }
 0x477   :  { %1567 = vmatpush3.xpose.msra.mxu0 %v640_v0  ;;  %1577 = vmatpush3.xpose.msra.mxu1 %v640_v0  ;;  %p1944_p13 = por %p1943_p12, %p1942_p11 }
 0x478   :  { %1578 = vmatprep.mubr.msk.f32.mxu1 %vm1971_vm0, %v1972_v46  ;;  %1808 = vmatprep.subr.bf16.mxu1 %v1970_v25 }
 0x479   :  { %p1945_p0 = pnand %p1944_p13, %p1938_p10 }
 0x47a   :  { %1569 = vmatmul.mubr.f32.vlgmr.msra.gmra.mrb[8].mxu0 %v816_v60 }
 0x47e   :  { %1579 = vmatmul.mubr.f32.vlgmr.msra.gmra.mrb[6].mxu1 %v640_v0 }
 0x47f   :  { %1810 = vmatpush3.bf16.msra.mxu1 %v1809_v3  ;;  %1613 = vmatprep.mubr.msk.f32.mxu1 %vm1971_vm0, %v1972_v46 }
 0x480   :  { %1811 = vmatprep.subr.bf16.mxu1 %v1970_v25 }
 0x483   :  { %1813 = vmatpush3.bf16.msra.mxu1 %v1812_v6 }
 0x484   :  { %1814 = vmatprep.subr.bf16.mxu1 %v1970_v25 }
 0x487   :  { %1816 = vmatpush3.bf16.msra.mxu1 %v1815_v9 }
 0x488   :  { %1817 = vmatprep.subr.bf16.mxu1 %v1970_v25 }
 0x48b   :  { %1819 = vmatpush3.bf16.msra.mxu1 %v1818_v12 }
 0x48c   :  { %1820 = vmatprep.subr.bf16.mxu1 %v1970_v25 }
 0x48f   :  { %1822 = vmatpush3.bf16.msra.mxu1 %v1821_v15 }
 0x490   :  { %1823 = vmatprep.subr.bf16.mxu1 %v1970_v25 }
 0x493   :  { %1825 = vmatpush3.bf16.msra.mxu1 %v1824_v18 }
 0x494   :  { %1826 = vmatprep.subr.bf16.mxu1 %v1970_v25 }
 0x497   :  { %1828 = vmatpush3.bf16.msra.mxu1 %v1827_v21  ;;  %v1181_v21 = vand.u32 127, %v1180_v20 }
 0x498   :  { %1829 = vmatprep.subr.bf16.mxu1 %v1970_v25 }
 0x49b   :  { %1831 = vmatpush3.bf16.msra.mxu1 %v1830_v24 }
 0x49e   :  { %1614 = vmatmul.mubr.f32.vlgmr.msra.gmra.mrb[8].mxu1 %v640_v0 }
 0x54d   :  { %v883_v26 = vpop.f32.mrb[8].mxu0 }
 0x54e   :  { %v1570_v27 = vpop.f32.mrb[9].mxu0  ;;  %v1040_v28 = vsel %vm1028_vm1, %v883_v26, -inf }
 0x54f   :  { %1041 = vmax.xlane.f32.xlu0 %v1040_v28  ;;  %v1062_v29 = vrot.slane %v1040_v28, 4 }
 0x551   :  { %v1063_v30 = vmax.f32 %v1040_v28, %v1062_v29  ;;  %v1023_v31 = vpop.f32.mrb[6].mxu1 }
 0x552   :  { %v1027_v32 = vmul.f32 0.5, %v1023_v31  ;;  %v1580_v33 = vpop.f32.mrb[7].mxu1 }
 0x553   :  { %v1064_v34 = vrot.slane %v1063_v30, 2 }
 0x554   :  { %v1029_v35 = vsel %vm1028_vm1, %v1027_v32, -inf }
 0x555   :  { %v1065_v36 = vmax.f32 %v1063_v30, %v1064_v34  ;;  %1030 = vmax.xlane.f32.xlu1 %v1029_v35 }
 0x557   :  { %v1066_v37 = vrot.slane %v1065_v36, 1 }
 0x559   :  { %v1067_v25 = vmax.f32 %v1065_v36, %v1066_v37 }
 0x55b   :  { %v1068_v38 = vsub.f32 %v883_v26, %v1067_v25 }
 0x55d   :  { %v1069_v60 = vmul.f32 1.442695, %v1068_v38 }
 0x571   :  { %v1166_v40 = vpop.f32.mrb[8].mxu1 }
 0x572   :  { %v1167_v41 = vadd.f32 %v1228_v39, %v1166_v40  ;;  %v1615_v42 = vpop.f32.mrb[9].mxu1 }
 0x574   :  { %1170 = vmax.xlane.f32.xlu0 %v1167_v41 }
 0x5dc   :  { %v1042_v44 = vpop.xlane.xlu0 %1041 }
 0x5dd   :  { %v1043_v45 = vsub.f32 %v883_v26, %v1042_v44 }
 0x5df   :  { %v1044_v47 = vmul.f32 1.442695, %v1043_v45 }
 0x5e1   :  { %1855 = vpow2.f32 %v1044_v47 }
 0x5e2   :  { %v1031_v48 = vpop.xlane.xlu1 %1030 }
 0x5e3   :  { %v1032_v49 = vsub.f32 %v1027_v32, %v1031_v48 }
 0x5e5   :  { %v1033_v50 = vmul.f32 1.442695, %v1032_v49 }
 0x5e7   :  { %1857 = vpow2.f32 %v1033_v50 }
 0x5eb   :  { %v1856_v52 = vpop.eup %1855 }
 0x5ec   :  { %v1046_v53 = vsel %vm1028_vm1, %v1856_v52, 0.0 }
 0x5ed   :  { %1047 = vadd.xlane.f32.xlu1 %v1046_v53 }
 0x5f1   :  { %v1858_v51 = vpop.eup %1857 }
 0x5f2   :  { %v1035_v54 = vsel %vm1028_vm1, %v1858_v51, 0.0 }
 0x5f3   :  { %1036 = vadd.xlane.f32.xlu0 %v1035_v54 }
 0x601   :  { %v1171_v55 = vpop.xlane.xlu0 %1170 }
 0x602   :  { %v1172_v56 = vsub.f32 %v1167_v41, %v1171_v55 }
 0x604   :  { %v1173_v57 = vmul.f32 1.442695, %v1172_v56 }
 0x606   :  { %1859 = vpow2.f32 %v1173_v57 }
 0x607   :  { %1861 = vpow2.f32 %v1069_v60 }
 0x609   :  { %1184 = vperm.xlu0 %1844, %v1182_v58  }
 0x610   :  { %v1860_v59 = vpop.eup %1859 }
 0x611   :  { %1175 = vadd.xlane.f32.xlu1 %v1860_v59  ;;  %v1862_v61 = vpop.eup %1861 }
 0x612   :  { %v1071_v62 = vsel %vm1028_vm1, %v1862_v61, 0.0 }
 0x613   :  { %v1072_v63 = vrot.slane %v1071_v62, 4 }
 0x615   :  { %v1073_v0 = vadd.f32 %v1072_v63, %v1071_v62 }
 0x617   :  { %v1074_v1 = vrot.slane %v1073_v0, 2 }
 0x619   :  { %v1075_v2 = vadd.f32 %v1074_v1, %v1073_v0 }
 0x61b   :  { %v1076_v3 = vrot.slane %v1075_v2, 1 }
 0x61d   :  { %v1077_v4 = vadd.f32 %v1076_v3, %v1075_v2 }
 0x67a   :  { %v1048_v5 = vpop.xlane.xlu1 %1047 }
 0x67b   :  { %1863 = vlog2.f32 %v1048_v5 }
 0x67c   :  { %1865 = vlog2.f32 %v1077_v4 }
 0x680   :  { %v1037_v6 = vpop.xlane.xlu0 %1036 }
 0x681   :  { %1867 = vrcp.f32 %v1037_v6 }
 0x685   :  { %v1864_v7 = vpop.eup %1863 }
 0x686   :  { %v1866_v8 = vpop.eup %1865  ;;  %v1050_v9 = vmul.f32 0.6931472, %v1864_v7 }
 0x687   :  { %v1079_v10 = vmul.f32 0.6931472, %v1866_v8 }
 0x688   :  { %v1051_v13 = vsub.f32 %v1043_v45, %v1050_v9  ;;  %v1185_v22 = vpop.permute.xlu0 %1184 }
 0x689   :  { %v1080_v15 = vsub.f32 %v1068_v38, %v1079_v10  ;;  %vm1186_vm2 = vcmp.eq.s32.totalorder %v1181_v21, %v1185_v22 }
 0x68a   :  { %v1229_v26 = vsel %vm1186_vm2, 1.0, %v1972_v46 }
 0x68b   :  { %v1868_v11 = vpop.eup %1867 }
 0x68c   :  { %v1039_v12 = vmul.f32 %v1868_v11, %v1858_v51 }
 0x68e   :  { %v1052_v14 = vmul.f32 %v1051_v13, %v1039_v12  ;;  %v1081_v17 = vmul.f32 %v1080_v15, %v1039_v12 }
 0x690   :  { %v1053_v16 = vsel %vm1028_vm1, %v1052_v14, 0.0  ;;  %v1082_v18 = vsel %vm1028_vm1, %v1081_v17, 0.0 }
 0x691   :  { %1054 = vadd.xlane.f32.xlu1 %v1053_v16 }
 0x695   :  { %1083 = vadd.xlane.f32.xlu1 %v1082_v18 }
 0x69e   :  { %v1176_v19 = vpop.xlane.xlu1 %1175 }
 0x69f   :  { %1869 = vlog2.f32 %v1176_v19 }
 0x6a9   :  { %v1870_v23 = vpop.eup %1869 }
 0x6aa   :  { %v1178_v24 = vmul.f32 0.6931472, %v1870_v23 }
 0x6ac   :  { %v1179_v27 = vsub.f32 %v1172_v56, %v1178_v24 }
 0x6ae   :  { %v1189_v28 = vmul.f32 %v1229_v26, %v1179_v27 }
 0x6b0   :  { %1190 = vadd.xlane.f32.xlu1 %v1189_v28 }
 0x71e   :  { %v1055_v29 = vpop.xlane.xlu1 %1054 }
 0x71f   :  { %v1056_v32 = vrot.slane %v1055_v29, 4 }
 0x721   :  { %v1057_v34 = vadd.f32 %v1056_v32, %v1055_v29 }
 0x722   :  { %v1084_v30 = vpop.xlane.xlu1 %1083 }
 0x723   :  { %v1085_v31 = vrot.slane %v1084_v30, 4  ;;  %v1058_v36 = vrot.slane %v1057_v34, 2 }
 0x725   :  { %v1086_v33 = vadd.f32 %v1085_v31, %v1084_v30  ;;  %v1059_v25 = vadd.f32 %v1058_v36, %v1057_v34 }
 0x727   :  { %v1087_v35 = vrot.slane %v1086_v33, 2  ;;  %v1060_v39 = vrot.slane %v1059_v25, 1 }
 0x729   :  { %v1088_v37 = vadd.f32 %v1087_v35, %v1086_v33  ;;  %v1061_v42 = vadd.f32 %v1060_v39, %v1059_v25 }
 0x72b   :  { %v1089_v38 = vrot.slane %v1088_v37, 1  ;;  %v1092_v45 = vmul.f32 0.25, %v1061_v42 }
 0x72d   :  { %v1090_v40 = vadd.f32 %v1089_v38, %v1088_v37 }
 0x72f   :  { %v1091_v46 = vmul.f32 0.75, %v1090_v40 }
 0x731   :  { %v1093_v48 = vadd.f32 %v1092_v45, %v1091_v46 }
 0x733   :  { %v1094_v53 = vsub.f32 0.0, %v1093_v48 }
 0x735   :  { %v1095_v55 = vmul.f32 0.125, %v1094_v53 }
 0x73d   :  { %v1191_v41 = vpop.xlane.xlu1 %1190 }
 0x73e   :  { %v1192_v43 = vsub.f32 0.0, %v1191_v41 }
 0x740   :  { %v1193_v44 = vrot.slane %v1192_v43, 4 }
 0x742   :  { %v1194_v47 = vadd.f32 %v1193_v44, %v1192_v43 }
 0x744   :  { %v1195_v49 = vrot.slane %v1194_v47, 2 }
 0x746   :  { %v1196_v50 = vadd.f32 %v1195_v49, %v1194_v47 }
 0x748   :  { %v1197_v52 = vrot.slane %v1196_v50, 1 }
 0x74a   :  { %v1198_v51 = vadd.f32 %v1197_v52, %v1196_v50 }
 0x74c   :  { %v1199_v54 = vmul.f32 0.125, %v1198_v51 }
 0x74e   :  { %v1200_v56 = vadd.f32 %v1199_v54, %v1095_v55 }
 0x750   :  { %1202 = vst.msk [vmem:[#allocation8] sm:$0x1] %vm1201_vm3, %v1200_v56 }
 0x751   :  { %1948 = shalt.err (!%p1945_p0)
}
 0x752   :  { %s1949_s27 = scalar_lea.hbm %s2163_s5, 16 }
 0x753   :  { %p1950_p1 = scmp.ne.s32.totalorder %s2163_s5, %s1949_s27  ;;  %p1953_p2 = scmp.lt.u32.totalorder %s1949_s27, %s2163_s5 }
 0x755   :  { %p1955_p3 = pnand %p1953_p2, %p1950_p1 }
 0x757   :  { %1958 = shalt.err (!%p1955_p3)
}
 0x758   :  { %1212 = dma.vmem_to_hbm [thread:$0]  %s1210_s24, 16, %s2163_s5, [#allocation4]  }
 0x759   :  { %1963 = dma.done.wait [#allocation4], 16  }
 0x75a   :  { %1964 = vsyncadd [#allocation4], 4294967280 }
 0x75b   :  { %1216 = vsyncpa [#allocation3], 1 }
 0x75c   :  { %1217 = vsyncpa [#allocation6], 1 }
 0x75d   :  { %1218 = vsyncpa [#allocation4], 1 }

</bundles_post_ra>
